<compile_context>
chip_gen: v7x
topology: tpu7x:2x2x1
jax: 0.10.0
libtpu: 0.0.40
codegen_flags: <defaults>
</compile_context>

<pallas_src>
import math
import jax
import jax.numpy as jnp
from jax import lax
from jax.experimental import pallas as pl
from jax.experimental.pallas import tpu as pltpu

# ----- scaled-down config -----
B, S, H = 2, 8, 128          # batch, seq, hidden (featureDim)
BS = B * S
NH, DH = 4, 32               # heads, head dim
I = 256                      # FFN intermediate
CLS_NUM = 7                  # clsNumber
LOGITS_PAD = 128             # lane-dense logits width (sliced to CLS_NUM outside)
VOCAB, MAX_POS, N_TYPES = 64, 16, 2
N_LAYERS = 2
LN_EPS = 1e-12

# rows of the packed per-layer small-params array (L, N_SMALL, H)
IDX_BQ, IDX_BK, IDX_BV, IDX_BO = 0, 1, 2, 3
IDX_LN1G, IDX_LN1B = 4, 5
IDX_B2, IDX_LN2G, IDX_LN2B = 6, 7, 8
IDX_EMBG, IDX_EMBB = 9, 10
N_SMALL = 11


# ---------------- in-kernel helpers ----------------
def _layer_norm(x, gamma, beta):
    mean = jnp.mean(x, axis=-1, keepdims=True)
    var = jnp.mean((x - mean) ** 2, axis=-1, keepdims=True)
    return (x - mean) * lax.rsqrt(var + LN_EPS) * gamma + beta


def _gelu(x):
    # TODO(synk): HF BERT uses exact erf-based GELU; tanh approximation kept here.
    c = math.sqrt(2.0 / math.pi)
    return 0.5 * x * (1.0 + jnp.tanh(c * (x + 0.044715 * x * x * x)))


# ---------------- fused Pallas kernel (one grid step == one encoder layer) ----------------
def fused_forward_kernel(lens_ref,                     # SMEM (B,) int32 seq lengths
                         emb_ref,                      # (BS, H) f32 summed embeddings
                         small_ref,                    # (N_SMALL, H) f32 packed biases / LN
                         b1_ref,                       # (1, I) f32 FFN bias 1
                         wqkvo_ref,                    # (4, H, H) bf16 attention weights
                         w1_ref, w2_ref,               # (H, I) / (I, H) bf16 FFN weights
                         wc_ref, bc_ref,               # (H, 128) bf16 / (1, 128) f32 classifier
                         logits_ref, cls_ref,          # outputs (resident across grid)
                         x_ref):                       # VMEM scratch: activations (BS, H) f32
    l = pl.program_id(0)

    def row(i):                                        # (1, H) static slice of packed params
        return small_ref[i:i + 1, :]

    # ---- embedding LayerNorm only on the first grid step ----
    @pl.when(l == 0)
    def _():
        x_ref[...] = _layer_norm(emb_ref[...].astype(jnp.float32),
                                 row(IDX_EMBG), row(IDX_EMBB))

    x = x_ref[...]

    # Block-diagonal additive attention mask over the flattened (BS, BS) score matrix,
    # rebuilt each step from SMEM lengths (1 vreg of VPU work).  Matches the HF
    # extended attention mask: invalid / cross-batch keys get -10000.
    r = lax.broadcasted_iota(jnp.int32, (BS, BS), 0)
    c = lax.broadcasted_iota(jnp.int32, (BS, BS), 1)
    addm = jnp.full((BS, BS), -10000.0, jnp.float32)
    for b in range(B):                                 # static unroll, B = 2
        row_in_b = (r >= b * S) & (r < (b + 1) * S)
        col_valid = (c >= b * S) & (c < b * S + lens_ref[b])
        addm = jnp.where(row_in_b & col_valid, 0.0, addm)

    scale = 1.0 / math.sqrt(DH)
    xb = x.astype(jnp.bfloat16)                        # bf16 operand for the MXU
    q = jnp.dot(xb, wqkvo_ref[0], preferred_element_type=jnp.float32) + row(IDX_BQ)
    k = jnp.dot(xb, wqkvo_ref[1], preferred_element_type=jnp.float32) + row(IDX_BK)
    v = jnp.dot(xb, wqkvo_ref[2], preferred_element_type=jnp.float32) + row(IDX_BV)

    # Per-head attention, lane-dense accumulation through a static slice of the
    # output-projection REF (no transposes, no lane concatenate, no wo value held live).
    attn = jnp.zeros((BS, H), jnp.float32)
    for h in range(NH):                                # static unroll over heads
        cs = slice(h * DH, (h + 1) * DH)
        qh, kh, vh = q[:, cs], k[:, cs], v[:, cs]
        # NT matmul: contract the head dim of both operands (no explicit kh.T / XLU vxpose).
        s = lax.dot_general(qh, kh, (((1,), (1,)), ((), ())),
                            preferred_element_type=jnp.float32) * scale + addm
        s = s - jnp.max(s, axis=-1, keepdims=True)
        p = jnp.exp(s)
        p = p * pl.reciprocal(jnp.sum(p, axis=-1, keepdims=True), approx=True)
        ctx = jnp.dot(p, vh, preferred_element_type=jnp.float32)          # (BS, DH)
        attn = attn + jnp.dot(ctx.astype(jnp.bfloat16),
                              wqkvo_ref[3, h * DH:(h + 1) * DH, :],
                              preferred_element_type=jnp.float32)         # (BS, H)

    x = _layer_norm(x + attn + row(IDX_BO), row(IDX_LN1G), row(IDX_LN1B))

    hmid = _gelu(jnp.dot(x.astype(jnp.bfloat16), w1_ref[...],
                         preferred_element_type=jnp.float32) + b1_ref[...])
    ffn = jnp.dot(hmid.astype(jnp.bfloat16), w2_ref[...],
                  preferred_element_type=jnp.float32) + row(IDX_B2)
    x = _layer_norm(x + ffn, row(IDX_LN2G), row(IDX_LN2B))

    x_ref[...] = x                                     # carry to next grid step

    # ---- CLS extraction + fused classifier on the last grid step ----
    @pl.when(l == pl.num_programs(0) - 1)
    def _():
        sel_r = lax.broadcasted_iota(jnp.int32, (B, BS), 0)
        sel_c = lax.broadcasted_iota(jnp.int32, (B, BS), 1)
        sel = jnp.where(sel_c == sel_r * S, 1.0, 0.0)  # one-hot picks token 0 per batch
        cls = jnp.dot(sel, x, preferred_element_type=jnp.float32)         # (B, H)
        cls_ref[...] = cls.astype(cls_ref.dtype)
        logits_ref[...] = (jnp.dot(cls.astype(jnp.bfloat16), wc_ref[...],
                                   preferred_element_type=jnp.float32)
                           + bc_ref[...]).astype(logits_ref.dtype)


# ---------------- wrapper ----------------
def intent_bert_fused_call(lens, emb2d, params):
    grid_spec = pltpu.PrefetchScalarGridSpec(
        num_scalar_prefetch=1,                         # lens -> SMEM
        grid=(N_LAYERS,),                              # one grid step per encoder layer
        in_specs=[
            pl.BlockSpec((BS, H), lambda l, lns: (0, 0)),                    # emb2d
            pl.BlockSpec((None, N_SMALL, H), lambda l, lns: (l, 0, 0)),      # packed small params
            pl.BlockSpec((None, 1, I), lambda l, lns: (l, 0, 0)),            # FFN bias 1
            pl.BlockSpec((None, 4, H, H), lambda l, lns: (l, 0, 0, 0)),      # qkvo weights (bf16)
            pl.BlockSpec((None, H, I), lambda l, lns: (l, 0, 0)),            # w1 (bf16)
            pl.BlockSpec((None, I, H), lambda l, lns: (l, 0, 0)),            # w2 (bf16)
            pl.BlockSpec((H, LOGITS_PAD), lambda l, lns: (0, 0)),            # classifier W (bf16)
            pl.BlockSpec((1, LOGITS_PAD), lambda l, lns: (0, 0)),            # classifier b
        ],
        out_specs=(pl.BlockSpec((B, LOGITS_PAD), lambda l, lns: (0, 0)),
                   pl.BlockSpec((B, H), lambda l, lns: (0, 0))),
        scratch_shapes=[pltpu.VMEM((BS, H), jnp.float32)],                   # resident activations
    )
    return pl.pallas_call(
        fused_forward_kernel,
        out_shape=(jax.ShapeDtypeStruct((B, LOGITS_PAD), jnp.float32),
                   jax.ShapeDtypeStruct((B, H), jnp.float32)),
        grid_spec=grid_spec,
        compiler_params=pltpu.CompilerParams(dimension_semantics=("arbitrary",)),
    )(lens, emb2d, params["small"], params["b1s"], params["wqkvo"],
      params["w1"], params["w2"], params["wc_pad"], params["bc_pad"])


# ---------------- parameters (deterministic, synthetic, layer-stacked & packed) ----------------
def init_params(key):
    keys = iter(jax.random.split(key, 64))

    def nrm(shape):
        return 0.02 * jax.random.normal(next(keys), shape, jnp.float32)

    L = N_LAYERS
    wq, wk, wv, wo = nrm((L, H, H)), nrm((L, H, H)), nrm((L, H, H)), nrm((L, H, H))
    w1, w2 = nrm((L, H, I)), nrm((L, I, H))
    wc = nrm((H, CLS_NUM))                             # linearClsfier weight (transposed)
    bc = jnp.zeros((CLS_NUM,), jnp.float32)

    # Pack the tiny per-layer bias / LN vectors (and embedding-LN params) into one
    # (L, N_SMALL, H) array -> one DMA descriptor per layer instead of ~10.
    small = jnp.zeros((L, N_SMALL, H), jnp.float32)
    small = small.at[:, IDX_LN1G].set(1.0)
    small = small.at[:, IDX_LN2G].set(1.0)
    small = small.at[:, IDX_EMBG].set(1.0)
    # (all bias rows and LN-beta rows stay zero in this synthetic stand-in)

    b1s = jnp.zeros((L, 1, I), jnp.float32)

    # Pack the four attention weights along a new axis and cast the big matrices to bf16.
    wqkvo = jnp.stack([wq, wk, wv, wo], axis=1).astype(jnp.bfloat16)         # (L, 4, H, H)

    # Lane-padded classifier, precomputed once (hoisted out of the forward path).
    wc_pad = jnp.zeros((H, LOGITS_PAD), jnp.float32).at[:, :CLS_NUM].set(wc)
    bc_pad = jnp.zeros((1, LOGITS_PAD), jnp.float32).at[0, :CLS_NUM].set(bc)

    return {
        "tok_emb": nrm((VOCAB, H)),
        "pos_emb": nrm((MAX_POS, H)),
        "type_emb": nrm((N_TYPES, H)),
        "small": small,
        "b1s": b1s,
        "wqkvo": wqkvo,
        "w1": w1.astype(jnp.bfloat16),
        "w2": w2.astype(jnp.bfloat16),
        "wc_pad": wc_pad.astype(jnp.bfloat16),
        "bc_pad": bc_pad,
    }


# ---------------- IntentBERT.forward ----------------
def intent_bert_forward(input_ids, token_type_ids, attention_mask, params,
                        return_embedding=False):
    # Embedding gathers stay in plain JAX glue (tiny tables, data-dependent gather).
    pos_ids = jnp.arange(S)
    emb = (params["tok_emb"][input_ids]
           + params["pos_emb"][pos_ids][None, :, :]
           + params["type_emb"][token_type_ids])
    emb2d = emb.reshape(BS, H)

    # TODO(synk): lengths assume the usual HF prefix-style attention_mask; arbitrary
    # hole masks would need the full additive mask instead.
    lens = jnp.sum(attention_mask.astype(jnp.int32), axis=-1)          # (B,) int32

    logits_pad, cls_emb = intent_bert_fused_call(lens, emb2d, params)
    logits = logits_pad[:, :CLS_NUM]
    if return_embedding:
        return logits, cls_emb
    return logits


if __name__ == "__main__":
    root = jax.random.PRNGKey(0)
    k_param, k_ids = jax.random.split(root)
    params = init_params(k_param)

    input_ids = jax.random.randint(k_ids, (B, S), 0, VOCAB, dtype=jnp.int32)
    token_type_ids = jnp.zeros((B, S), jnp.int32)
    attention_mask = jnp.ones((B, S), jnp.int32).at[1, -2:].set(0)  # some padding

    logits, cls_emb = intent_bert_forward(input_ids, token_type_ids,
                                          attention_mask, params,
                                          return_embedding=True)
    jax.block_until_ready((logits, cls_emb))
    assert logits.shape == (B, CLS_NUM) and cls_emb.shape == (B, H)
    print("KERNEL_OK")
</pallas_src>

<mosaic_0001>
module attributes {stable_mosaic.version = 11 : i64} {
  func.func @fused_forward_kernel(%arg0: i32, %arg1: memref<2xi32, #tpu.memory_space<smem>>, %arg2: memref<16x128xf32, #tpu.memory_space<vmem>>, %arg3: memref<1x11x128xf32, #tpu.memory_space<vmem>>, %arg4: memref<1x1x256xf32, #tpu.memory_space<vmem>>, %arg5: memref<1x4x128x128xbf16, #tpu.memory_space<vmem>>, %arg6: memref<1x128x256xbf16, #tpu.memory_space<vmem>>, %arg7: memref<1x256x128xbf16, #tpu.memory_space<vmem>>, %arg8: memref<128x128xbf16, #tpu.memory_space<vmem>>, %arg9: memref<1x128xf32, #tpu.memory_space<vmem>>, %arg10: memref<2x128xf32, #tpu.memory_space<vmem>>, %arg11: memref<2x128xf32, #tpu.memory_space<vmem>>, %arg12: memref<16x128xf32, #tpu.memory_space<vmem>>) attributes {dimension_semantics = [#tpu.dimension_semantics<arbitrary>], iteration_bounds = array<i64: 2>, scalar_prefetch = 1 : i64, scratch_operands = 1 : i64, tpu.core_type = #tpu.core_type<tc>, window_params = [{pipeline_mode = #tpu.pipeline_mode<synchronous>, transform_indices = @transform_0, window_bounds = array<i64: 16, 128>}, {transform_indices = @transform_1, window_bounds = array<i64: 1, 11, 128>}, {transform_indices = @transform_2, window_bounds = array<i64: 1, 1, 256>}, {transform_indices = @transform_3, window_bounds = array<i64: 1, 4, 128, 128>}, {transform_indices = @transform_4, window_bounds = array<i64: 1, 128, 256>}, {transform_indices = @transform_5, window_bounds = array<i64: 1, 256, 128>}, {pipeline_mode = #tpu.pipeline_mode<synchronous>, transform_indices = @transform_6, window_bounds = array<i64: 128, 128>}, {pipeline_mode = #tpu.pipeline_mode<synchronous>, transform_indices = @transform_7, window_bounds = array<i64: 1, 128>}, {pipeline_mode = #tpu.pipeline_mode<synchronous>, transform_indices = @transform_8, window_bounds = array<i64: 2, 128>}, {pipeline_mode = #tpu.pipeline_mode<synchronous>, transform_indices = @transform_9, window_bounds = array<i64: 2, 128>}]} {
    %c0_i32 = arith.constant 0 : i32
    %0 = arith.cmpi eq, %arg0, %c0_i32 : i32
    %1 = arith.extui %0 : i1 to i32
    %c0_i32_0 = arith.constant 0 : i32
    %2 = arith.cmpi ne, %1, %c0_i32_0 : i32
    scf.if %2 {
      %c0_112 = arith.constant 0 : index
      %c0_113 = arith.constant 0 : index
      %243 = vector.load %arg2[%c0_112, %c0_113] : memref<16x128xf32, #tpu.memory_space<vmem>>, vector<16x128xf32>
      %c0_114 = arith.constant 0 : index
      %c9 = arith.constant 9 : index
      %c0_115 = arith.constant 0 : index
      %244 = vector.load %arg3[%c0_114, %c9, %c0_115] : memref<1x11x128xf32, #tpu.memory_space<vmem>>, vector<1x1x128xf32>
      %245 = vector.shape_cast %244 : vector<1x1x128xf32> to vector<1x128xf32>
      %c0_116 = arith.constant 0 : index
      %c10 = arith.constant 10 : index
      %c0_117 = arith.constant 0 : index
      %246 = vector.load %arg3[%c0_116, %c10, %c0_117] : memref<1x11x128xf32, #tpu.memory_space<vmem>>, vector<1x1x128xf32>
      %247 = vector.shape_cast %246 : vector<1x1x128xf32> to vector<1x128xf32>
      %cst_118 = arith.constant dense<0.000000e+00> : vector<16xf32>
      %248 = vector.multi_reduction <add>, %243, %cst_118 [1] : vector<16x128xf32> to vector<16xf32>
      %249 = vector.shape_cast %248 : vector<16xf32> to vector<16x1xf32>
      %cst_119 = arith.constant 1.280000e+02 : f32
      %250 = vector.broadcast %cst_119 : f32 to vector<16x1xf32>
      %251 = arith.divf %249, %250 : vector<16x1xf32>
      %252 = vector.broadcast %251 : vector<16x1xf32> to vector<16x128xf32>
      %253 = arith.subf %243, %252 : vector<16x128xf32>
      %254 = arith.mulf %253, %253 : vector<16x128xf32>
      %cst_120 = arith.constant dense<0.000000e+00> : vector<16xf32>
      %255 = vector.multi_reduction <add>, %254, %cst_120 [1] : vector<16x128xf32> to vector<16xf32>
      %256 = vector.shape_cast %255 : vector<16xf32> to vector<16x1xf32>
      %cst_121 = arith.constant 1.280000e+02 : f32
      %257 = vector.broadcast %cst_121 : f32 to vector<16x1xf32>
      %258 = arith.divf %256, %257 : vector<16x1xf32>
      %259 = vector.broadcast %251 : vector<16x1xf32> to vector<16x128xf32>
      %260 = arith.subf %243, %259 : vector<16x128xf32>
      %cst_122 = arith.constant 9.99999996E-13 : f32
      %261 = vector.broadcast %cst_122 : f32 to vector<16x1xf32>
      %262 = arith.addf %258, %261 : vector<16x1xf32>
      %263 = math.rsqrt %262 : vector<16x1xf32>
      %264 = vector.broadcast %263 : vector<16x1xf32> to vector<16x128xf32>
      %265 = arith.mulf %260, %264 : vector<16x128xf32>
      %266 = vector.broadcast %245 : vector<1x128xf32> to vector<16x128xf32>
      %267 = arith.mulf %265, %266 : vector<16x128xf32>
      %268 = vector.broadcast %247 : vector<1x128xf32> to vector<16x128xf32>
      %269 = arith.addf %267, %268 : vector<16x128xf32>
      %c0_123 = arith.constant 0 : index
      %c0_124 = arith.constant 0 : index
      %270 = vector.load %arg12[%c0_123, %c0_124] : memref<16x128xf32, #tpu.memory_space<vmem>>, vector<16x128xf32>
      tpu.vector_store %arg12[%c0_123, %c0_124], %269 {strides = array<i32>} : memref<16x128xf32, #tpu.memory_space<vmem>>, vector<16x128xf32>,
    } else {
    }
    %c0 = arith.constant 0 : index
    %c0_1 = arith.constant 0 : index
    %3 = vector.load %arg12[%c0, %c0_1] : memref<16x128xf32, #tpu.memory_space<vmem>>, vector<16x128xf32>
    %4 = tpu.iota {dimensions = array<i32: 0>} : vector<16x16xi32>
    %5 = tpu.iota {dimensions = array<i32: 1>} : vector<16x16xi32>
    %cst = arith.constant -1.000000e+04 : f32
    %6 = vector.broadcast %cst : f32 to vector<16x16xf32>
    %c0_i32_2 = arith.constant 0 : i32
    %7 = vector.broadcast %c0_i32_2 : i32 to vector<16x16xi32>
    %8 = arith.cmpi sge, %4, %7 : vector<16x16xi32>
    %c8_i32 = arith.constant 8 : i32
    %9 = vector.broadcast %c8_i32 : i32 to vector<16x16xi32>
    %10 = arith.cmpi slt, %4, %9 : vector<16x16xi32>
    %11 = arith.andi %8, %10 : vector<16x16xi1>
    %c0_i32_3 = arith.constant 0 : i32
    %12 = vector.broadcast %c0_i32_3 : i32 to vector<16x16xi32>
    %13 = arith.cmpi sge, %5, %12 : vector<16x16xi32>
    %c0_4 = arith.constant 0 : index
    %14 = memref.load %arg1[%c0_4] : memref<2xi32, #tpu.memory_space<smem>>
    %c0_i32_5 = arith.constant 0 : i32
    %15 = arith.addi %c0_i32_5, %14 : i32
    %16 = vector.broadcast %15 : i32 to vector<16x16xi32>
    %17 = arith.cmpi slt, %5, %16 : vector<16x16xi32>
    %18 = arith.andi %13, %17 : vector<16x16xi1>
    %19 = arith.andi %11, %18 : vector<16x16xi1>
    %cst_6 = arith.constant 0.000000e+00 : f32
    %20 = vector.broadcast %cst_6 : f32 to vector<16x16xf32>
    %21 = arith.select %19, %20, %6 : vector<16x16xi1>, vector<16x16xf32>
    %c8_i32_7 = arith.constant 8 : i32
    %22 = vector.broadcast %c8_i32_7 : i32 to vector<16x16xi32>
    %23 = arith.cmpi sge, %4, %22 : vector<16x16xi32>
    %c16_i32 = arith.constant 16 : i32
    %24 = vector.broadcast %c16_i32 : i32 to vector<16x16xi32>
    %25 = arith.cmpi slt, %4, %24 : vector<16x16xi32>
    %26 = arith.andi %23, %25 : vector<16x16xi1>
    %c8_i32_8 = arith.constant 8 : i32
    %27 = vector.broadcast %c8_i32_8 : i32 to vector<16x16xi32>
    %28 = arith.cmpi sge, %5, %27 : vector<16x16xi32>
    %c1 = arith.constant 1 : index
    %29 = memref.load %arg1[%c1] : memref<2xi32, #tpu.memory_space<smem>>
    %c8_i32_9 = arith.constant 8 : i32
    %30 = arith.addi %c8_i32_9, %29 : i32
    %31 = vector.broadcast %30 : i32 to vector<16x16xi32>
    %32 = arith.cmpi slt, %5, %31 : vector<16x16xi32>
    %33 = arith.andi %28, %32 : vector<16x16xi1>
    %34 = arith.andi %26, %33 : vector<16x16xi1>
    %cst_10 = arith.constant 0.000000e+00 : f32
    %35 = vector.broadcast %cst_10 : f32 to vector<16x16xf32>
    %36 = arith.select %34, %35, %21 : vector<16x16xi1>, vector<16x16xf32>
    %37 = arith.truncf %3 : vector<16x128xf32> to vector<16x128xbf16>
    %c0_11 = arith.constant 0 : index
    %c0_12 = arith.constant 0 : index
    %c0_13 = arith.constant 0 : index
    %c0_14 = arith.constant 0 : index
    %38 = vector.load %arg5[%c0_11, %c0_12, %c0_13, %c0_14] : memref<1x4x128x128xbf16, #tpu.memory_space<vmem>>, vector<1x1x128x128xbf16>
    %39 = vector.shape_cast %38 : vector<1x1x128x128xbf16> to vector<128x128xbf16>
    %cst_15 = arith.constant dense<0.000000e+00> : vector<16x128xf32>
    %40 = tpu.matmul %37, %39, %cst_15 {dimension_numbers = #tpu.dot_dimension_numbers<[1], [0], [0], [1], [0, 0, 1, 1], [], []>} : vector<16x128xbf16>, vector<128x128xbf16>, vector<16x128xf32> -> vector<16x128xf32>
    %c0_16 = arith.constant 0 : index
    %c0_17 = arith.constant 0 : index
    %c0_18 = arith.constant 0 : index
    %41 = vector.load %arg3[%c0_16, %c0_17, %c0_18] : memref<1x11x128xf32, #tpu.memory_space<vmem>>, vector<1x1x128xf32>
    %42 = vector.shape_cast %41 : vector<1x1x128xf32> to vector<1x128xf32>
    %43 = vector.broadcast %42 : vector<1x128xf32> to vector<16x128xf32>
    %44 = arith.addf %40, %43 : vector<16x128xf32>
    %c0_19 = arith.constant 0 : index
    %c1_20 = arith.constant 1 : index
    %c0_21 = arith.constant 0 : index
    %c0_22 = arith.constant 0 : index
    %45 = vector.load %arg5[%c0_19, %c1_20, %c0_21, %c0_22] : memref<1x4x128x128xbf16, #tpu.memory_space<vmem>>, vector<1x1x128x128xbf16>
    %46 = vector.shape_cast %45 : vector<1x1x128x128xbf16> to vector<128x128xbf16>
    %cst_23 = arith.constant dense<0.000000e+00> : vector<16x128xf32>
    %47 = tpu.matmul %37, %46, %cst_23 {dimension_numbers = #tpu.dot_dimension_numbers<[1], [0], [0], [1], [0, 0, 1, 1], [], []>} : vector<16x128xbf16>, vector<128x128xbf16>, vector<16x128xf32> -> vector<16x128xf32>
    %c0_24 = arith.constant 0 : index
    %c1_25 = arith.constant 1 : index
    %c0_26 = arith.constant 0 : index
    %48 = vector.load %arg3[%c0_24, %c1_25, %c0_26] : memref<1x11x128xf32, #tpu.memory_space<vmem>>, vector<1x1x128xf32>
    %49 = vector.shape_cast %48 : vector<1x1x128xf32> to vector<1x128xf32>
    %50 = vector.broadcast %49 : vector<1x128xf32> to vector<16x128xf32>
    %51 = arith.addf %47, %50 : vector<16x128xf32>
    %c0_27 = arith.constant 0 : index
    %c2 = arith.constant 2 : index
    %c0_28 = arith.constant 0 : index
    %c0_29 = arith.constant 0 : index
    %52 = vector.load %arg5[%c0_27, %c2, %c0_28, %c0_29] : memref<1x4x128x128xbf16, #tpu.memory_space<vmem>>, vector<1x1x128x128xbf16>
    %53 = vector.shape_cast %52 : vector<1x1x128x128xbf16> to vector<128x128xbf16>
    %cst_30 = arith.constant dense<0.000000e+00> : vector<16x128xf32>
    %54 = tpu.matmul %37, %53, %cst_30 {dimension_numbers = #tpu.dot_dimension_numbers<[1], [0], [0], [1], [0, 0, 1, 1], [], []>} : vector<16x128xbf16>, vector<128x128xbf16>, vector<16x128xf32> -> vector<16x128xf32>
    %c0_31 = arith.constant 0 : index
    %c2_32 = arith.constant 2 : index
    %c0_33 = arith.constant 0 : index
    %55 = vector.load %arg3[%c0_31, %c2_32, %c0_33] : memref<1x11x128xf32, #tpu.memory_space<vmem>>, vector<1x1x128xf32>
    %56 = vector.shape_cast %55 : vector<1x1x128xf32> to vector<1x128xf32>
    %57 = vector.broadcast %56 : vector<1x128xf32> to vector<16x128xf32>
    %58 = arith.addf %54, %57 : vector<16x128xf32>
    %cst_34 = arith.constant 0.000000e+00 : f32
    %59 = vector.broadcast %cst_34 : f32 to vector<16x128xf32>
    %60 = vector.extract_strided_slice %44 {offsets = [0, 0], sizes = [16, 32], strides = [1, 1]} : vector<16x128xf32> to vector<16x32xf32>
    %61 = vector.extract_strided_slice %51 {offsets = [0, 0], sizes = [16, 32], strides = [1, 1]} : vector<16x128xf32> to vector<16x32xf32>
    %62 = vector.extract_strided_slice %58 {offsets = [0, 0], sizes = [16, 32], strides = [1, 1]} : vector<16x128xf32> to vector<16x32xf32>
    %cst_35 = arith.constant dense<0.000000e+00> : vector<16x16xf32>
    %63 = tpu.matmul %60, %61, %cst_35 {dimension_numbers = #tpu.dot_dimension_numbers<[1], [1], [0], [0], [0, 0, 1, 0], [], []>} : vector<16x32xf32>, vector<16x32xf32>, vector<16x16xf32> -> vector<16x16xf32>
    %cst_36 = arith.constant 0.176776692 : f32
    %64 = vector.broadcast %cst_36 : f32 to vector<16x16xf32>
    %65 = arith.mulf %63, %64 : vector<16x16xf32>
    %66 = arith.addf %65, %36 : vector<16x16xf32>
    %cst_37 = arith.constant dense<0xFF800000> : vector<16xf32>
    %67 = vector.multi_reduction <maximumf>, %66, %cst_37 [1] : vector<16x16xf32> to vector<16xf32>
    %68 = vector.shape_cast %67 : vector<16xf32> to vector<16x1xf32>
    %69 = vector.broadcast %68 : vector<16x1xf32> to vector<16x16xf32>
    %70 = arith.subf %66, %69 : vector<16x16xf32>
    %71 = math.exp %70 : vector<16x16xf32>
    %cst_38 = arith.constant dense<0.000000e+00> : vector<16xf32>
    %72 = vector.multi_reduction <add>, %71, %cst_38 [1] : vector<16x16xf32> to vector<16xf32>
    %73 = vector.shape_cast %72 : vector<16xf32> to vector<16x1xf32>
    %74 = tpu.reciprocal %73 {approx = true} : vector<16x1xf32> -> vector<16x1xf32>
    %75 = vector.broadcast %74 : vector<16x1xf32> to vector<16x16xf32>
    %76 = arith.mulf %71, %75 : vector<16x16xf32>
    %cst_39 = arith.constant dense<0.000000e+00> : vector<16x32xf32>
    %77 = tpu.matmul %76, %62, %cst_39 {dimension_numbers = #tpu.dot_dimension_numbers<[1], [0], [0], [1], [0, 0, 1, 1], [], []>} : vector<16x16xf32>, vector<16x32xf32>, vector<16x32xf32> -> vector<16x32xf32>
    %78 = arith.truncf %77 : vector<16x32xf32> to vector<16x32xbf16>
    %c0_40 = arith.constant 0 : index
    %c3 = arith.constant 3 : index
    %c0_41 = arith.constant 0 : index
    %c0_42 = arith.constant 0 : index
    %79 = vector.load %arg5[%c0_40, %c3, %c0_41, %c0_42] : memref<1x4x128x128xbf16, #tpu.memory_space<vmem>>, vector<1x1x32x128xbf16>
    %80 = vector.shape_cast %79 : vector<1x1x32x128xbf16> to vector<32x128xbf16>
    %cst_43 = arith.constant dense<0.000000e+00> : vector<16x128xf32>
    %81 = tpu.matmul %78, %80, %cst_43 {dimension_numbers = #tpu.dot_dimension_numbers<[1], [0], [0], [1], [0, 0, 1, 1], [], []>} : vector<16x32xbf16>, vector<32x128xbf16>, vector<16x128xf32> -> vector<16x128xf32>
    %82 = arith.addf %59, %81 : vector<16x128xf32>
    %83 = vector.extract_strided_slice %44 {offsets = [0, 32], sizes = [16, 32], strides = [1, 1]} : vector<16x128xf32> to vector<16x32xf32>
    %84 = vector.extract_strided_slice %51 {offsets = [0, 32], sizes = [16, 32], strides = [1, 1]} : vector<16x128xf32> to vector<16x32xf32>
    %85 = vector.extract_strided_slice %58 {offsets = [0, 32], sizes = [16, 32], strides = [1, 1]} : vector<16x128xf32> to vector<16x32xf32>
    %cst_44 = arith.constant dense<0.000000e+00> : vector<16x16xf32>
    %86 = tpu.matmul %83, %84, %cst_44 {dimension_numbers = #tpu.dot_dimension_numbers<[1], [1], [0], [0], [0, 0, 1, 0], [], []>} : vector<16x32xf32>, vector<16x32xf32>, vector<16x16xf32> -> vector<16x16xf32>
    %cst_45 = arith.constant 0.176776692 : f32
    %87 = vector.broadcast %cst_45 : f32 to vector<16x16xf32>
    %88 = arith.mulf %86, %87 : vector<16x16xf32>
    %89 = arith.addf %88, %36 : vector<16x16xf32>
    %cst_46 = arith.constant dense<0xFF800000> : vector<16xf32>
    %90 = vector.multi_reduction <maximumf>, %89, %cst_46 [1] : vector<16x16xf32> to vector<16xf32>
    %91 = vector.shape_cast %90 : vector<16xf32> to vector<16x1xf32>
    %92 = vector.broadcast %91 : vector<16x1xf32> to vector<16x16xf32>
    %93 = arith.subf %89, %92 : vector<16x16xf32>
    %94 = math.exp %93 : vector<16x16xf32>
    %cst_47 = arith.constant dense<0.000000e+00> : vector<16xf32>
    %95 = vector.multi_reduction <add>, %94, %cst_47 [1] : vector<16x16xf32> to vector<16xf32>
    %96 = vector.shape_cast %95 : vector<16xf32> to vector<16x1xf32>
    %97 = tpu.reciprocal %96 {approx = true} : vector<16x1xf32> -> vector<16x1xf32>
    %98 = vector.broadcast %97 : vector<16x1xf32> to vector<16x16xf32>
    %99 = arith.mulf %94, %98 : vector<16x16xf32>
    %cst_48 = arith.constant dense<0.000000e+00> : vector<16x32xf32>
    %100 = tpu.matmul %99, %85, %cst_48 {dimension_numbers = #tpu.dot_dimension_numbers<[1], [0], [0], [1], [0, 0, 1, 1], [], []>} : vector<16x16xf32>, vector<16x32xf32>, vector<16x32xf32> -> vector<16x32xf32>
    %101 = arith.truncf %100 : vector<16x32xf32> to vector<16x32xbf16>
    %c0_49 = arith.constant 0 : index
    %c3_50 = arith.constant 3 : index
    %c32 = arith.constant 32 : index
    %c0_51 = arith.constant 0 : index
    %102 = vector.load %arg5[%c0_49, %c3_50, %c32, %c0_51] : memref<1x4x128x128xbf16, #tpu.memory_space<vmem>>, vector<1x1x32x128xbf16>
    %103 = vector.shape_cast %102 : vector<1x1x32x128xbf16> to vector<32x128xbf16>
    %cst_52 = arith.constant dense<0.000000e+00> : vector<16x128xf32>
    %104 = tpu.matmul %101, %103, %cst_52 {dimension_numbers = #tpu.dot_dimension_numbers<[1], [0], [0], [1], [0, 0, 1, 1], [], []>} : vector<16x32xbf16>, vector<32x128xbf16>, vector<16x128xf32> -> vector<16x128xf32>
    %105 = arith.addf %82, %104 : vector<16x128xf32>
    %106 = vector.extract_strided_slice %44 {offsets = [0, 64], sizes = [16, 32], strides = [1, 1]} : vector<16x128xf32> to vector<16x32xf32>
    %107 = vector.extract_strided_slice %51 {offsets = [0, 64], sizes = [16, 32], strides = [1, 1]} : vector<16x128xf32> to vector<16x32xf32>
    %108 = vector.extract_strided_slice %58 {offsets = [0, 64], sizes = [16, 32], strides = [1, 1]} : vector<16x128xf32> to vector<16x32xf32>
    %cst_53 = arith.constant dense<0.000000e+00> : vector<16x16xf32>
    %109 = tpu.matmul %106, %107, %cst_53 {dimension_numbers = #tpu.dot_dimension_numbers<[1], [1], [0], [0], [0, 0, 1, 0], [], []>} : vector<16x32xf32>, vector<16x32xf32>, vector<16x16xf32> -> vector<16x16xf32>
    %cst_54 = arith.constant 0.176776692 : f32
    %110 = vector.broadcast %cst_54 : f32 to vector<16x16xf32>
    %111 = arith.mulf %109, %110 : vector<16x16xf32>
    %112 = arith.addf %111, %36 : vector<16x16xf32>
    %cst_55 = arith.constant dense<0xFF800000> : vector<16xf32>
    %113 = vector.multi_reduction <maximumf>, %112, %cst_55 [1] : vector<16x16xf32> to vector<16xf32>
    %114 = vector.shape_cast %113 : vector<16xf32> to vector<16x1xf32>
    %115 = vector.broadcast %114 : vector<16x1xf32> to vector<16x16xf32>
    %116 = arith.subf %112, %115 : vector<16x16xf32>
    %117 = math.exp %116 : vector<16x16xf32>
    %cst_56 = arith.constant dense<0.000000e+00> : vector<16xf32>
    %118 = vector.multi_reduction <add>, %117, %cst_56 [1] : vector<16x16xf32> to vector<16xf32>
    %119 = vector.shape_cast %118 : vector<16xf32> to vector<16x1xf32>
    %120 = tpu.reciprocal %119 {approx = true} : vector<16x1xf32> -> vector<16x1xf32>
    %121 = vector.broadcast %120 : vector<16x1xf32> to vector<16x16xf32>
    %122 = arith.mulf %117, %121 : vector<16x16xf32>
    %cst_57 = arith.constant dense<0.000000e+00> : vector<16x32xf32>
    %123 = tpu.matmul %122, %108, %cst_57 {dimension_numbers = #tpu.dot_dimension_numbers<[1], [0], [0], [1], [0, 0, 1, 1], [], []>} : vector<16x16xf32>, vector<16x32xf32>, vector<16x32xf32> -> vector<16x32xf32>
    %124 = arith.truncf %123 : vector<16x32xf32> to vector<16x32xbf16>
    %c0_58 = arith.constant 0 : index
    %c3_59 = arith.constant 3 : index
    %c64 = arith.constant 64 : index
    %c0_60 = arith.constant 0 : index
    %125 = vector.load %arg5[%c0_58, %c3_59, %c64, %c0_60] : memref<1x4x128x128xbf16, #tpu.memory_space<vmem>>, vector<1x1x32x128xbf16>
    %126 = vector.shape_cast %125 : vector<1x1x32x128xbf16> to vector<32x128xbf16>
    %cst_61 = arith.constant dense<0.000000e+00> : vector<16x128xf32>
    %127 = tpu.matmul %124, %126, %cst_61 {dimension_numbers = #tpu.dot_dimension_numbers<[1], [0], [0], [1], [0, 0, 1, 1], [], []>} : vector<16x32xbf16>, vector<32x128xbf16>, vector<16x128xf32> -> vector<16x128xf32>
    %128 = arith.addf %105, %127 : vector<16x128xf32>
    %129 = vector.extract_strided_slice %44 {offsets = [0, 96], sizes = [16, 32], strides = [1, 1]} : vector<16x128xf32> to vector<16x32xf32>
    %130 = vector.extract_strided_slice %51 {offsets = [0, 96], sizes = [16, 32], strides = [1, 1]} : vector<16x128xf32> to vector<16x32xf32>
    %131 = vector.extract_strided_slice %58 {offsets = [0, 96], sizes = [16, 32], strides = [1, 1]} : vector<16x128xf32> to vector<16x32xf32>
    %cst_62 = arith.constant dense<0.000000e+00> : vector<16x16xf32>
    %132 = tpu.matmul %129, %130, %cst_62 {dimension_numbers = #tpu.dot_dimension_numbers<[1], [1], [0], [0], [0, 0, 1, 0], [], []>} : vector<16x32xf32>, vector<16x32xf32>, vector<16x16xf32> -> vector<16x16xf32>
    %cst_63 = arith.constant 0.176776692 : f32
    %133 = vector.broadcast %cst_63 : f32 to vector<16x16xf32>
    %134 = arith.mulf %132, %133 : vector<16x16xf32>
    %135 = arith.addf %134, %36 : vector<16x16xf32>
    %cst_64 = arith.constant dense<0xFF800000> : vector<16xf32>
    %136 = vector.multi_reduction <maximumf>, %135, %cst_64 [1] : vector<16x16xf32> to vector<16xf32>
    %137 = vector.shape_cast %136 : vector<16xf32> to vector<16x1xf32>
    %138 = vector.broadcast %137 : vector<16x1xf32> to vector<16x16xf32>
    %139 = arith.subf %135, %138 : vector<16x16xf32>
    %140 = math.exp %139 : vector<16x16xf32>
    %cst_65 = arith.constant dense<0.000000e+00> : vector<16xf32>
    %141 = vector.multi_reduction <add>, %140, %cst_65 [1] : vector<16x16xf32> to vector<16xf32>
    %142 = vector.shape_cast %141 : vector<16xf32> to vector<16x1xf32>
    %143 = tpu.reciprocal %142 {approx = true} : vector<16x1xf32> -> vector<16x1xf32>
    %144 = vector.broadcast %143 : vector<16x1xf32> to vector<16x16xf32>
    %145 = arith.mulf %140, %144 : vector<16x16xf32>
    %cst_66 = arith.constant dense<0.000000e+00> : vector<16x32xf32>
    %146 = tpu.matmul %145, %131, %cst_66 {dimension_numbers = #tpu.dot_dimension_numbers<[1], [0], [0], [1], [0, 0, 1, 1], [], []>} : vector<16x16xf32>, vector<16x32xf32>, vector<16x32xf32> -> vector<16x32xf32>
    %147 = arith.truncf %146 : vector<16x32xf32> to vector<16x32xbf16>
    %c0_67 = arith.constant 0 : index
    %c3_68 = arith.constant 3 : index
    %c96 = arith.constant 96 : index
    %c0_69 = arith.constant 0 : index
    %148 = vector.load %arg5[%c0_67, %c3_68, %c96, %c0_69] : memref<1x4x128x128xbf16, #tpu.memory_space<vmem>>, vector<1x1x32x128xbf16>
    %149 = vector.shape_cast %148 : vector<1x1x32x128xbf16> to vector<32x128xbf16>
    %cst_70 = arith.constant dense<0.000000e+00> : vector<16x128xf32>
    %150 = tpu.matmul %147, %149, %cst_70 {dimension_numbers = #tpu.dot_dimension_numbers<[1], [0], [0], [1], [0, 0, 1, 1], [], []>} : vector<16x32xbf16>, vector<32x128xbf16>, vector<16x128xf32> -> vector<16x128xf32>
    %151 = arith.addf %128, %150 : vector<16x128xf32>
    %152 = arith.addf %3, %151 : vector<16x128xf32>
    %c0_71 = arith.constant 0 : index
    %c3_72 = arith.constant 3 : index
    %c0_73 = arith.constant 0 : index
    %153 = vector.load %arg3[%c0_71, %c3_72, %c0_73] : memref<1x11x128xf32, #tpu.memory_space<vmem>>, vector<1x1x128xf32>
    %154 = vector.shape_cast %153 : vector<1x1x128xf32> to vector<1x128xf32>
    %155 = vector.broadcast %154 : vector<1x128xf32> to vector<16x128xf32>
    %156 = arith.addf %152, %155 : vector<16x128xf32>
    %c0_74 = arith.constant 0 : index
    %c4 = arith.constant 4 : index
    %c0_75 = arith.constant 0 : index
    %157 = vector.load %arg3[%c0_74, %c4, %c0_75] : memref<1x11x128xf32, #tpu.memory_space<vmem>>, vector<1x1x128xf32>
    %158 = vector.shape_cast %157 : vector<1x1x128xf32> to vector<1x128xf32>
    %c0_76 = arith.constant 0 : index
    %c5 = arith.constant 5 : index
    %c0_77 = arith.constant 0 : index
    %159 = vector.load %arg3[%c0_76, %c5, %c0_77] : memref<1x11x128xf32, #tpu.memory_space<vmem>>, vector<1x1x128xf32>
    %160 = vector.shape_cast %159 : vector<1x1x128xf32> to vector<1x128xf32>
    %cst_78 = arith.constant dense<0.000000e+00> : vector<16xf32>
    %161 = vector.multi_reduction <add>, %156, %cst_78 [1] : vector<16x128xf32> to vector<16xf32>
    %162 = vector.shape_cast %161 : vector<16xf32> to vector<16x1xf32>
    %cst_79 = arith.constant 1.280000e+02 : f32
    %163 = vector.broadcast %cst_79 : f32 to vector<16x1xf32>
    %164 = arith.divf %162, %163 : vector<16x1xf32>
    %165 = vector.broadcast %164 : vector<16x1xf32> to vector<16x128xf32>
    %166 = arith.subf %156, %165 : vector<16x128xf32>
    %167 = arith.mulf %166, %166 : vector<16x128xf32>
    %cst_80 = arith.constant dense<0.000000e+00> : vector<16xf32>
    %168 = vector.multi_reduction <add>, %167, %cst_80 [1] : vector<16x128xf32> to vector<16xf32>
    %169 = vector.shape_cast %168 : vector<16xf32> to vector<16x1xf32>
    %cst_81 = arith.constant 1.280000e+02 : f32
    %170 = vector.broadcast %cst_81 : f32 to vector<16x1xf32>
    %171 = arith.divf %169, %170 : vector<16x1xf32>
    %172 = vector.broadcast %164 : vector<16x1xf32> to vector<16x128xf32>
    %173 = arith.subf %156, %172 : vector<16x128xf32>
    %cst_82 = arith.constant 9.99999996E-13 : f32
    %174 = vector.broadcast %cst_82 : f32 to vector<16x1xf32>
    %175 = arith.addf %171, %174 : vector<16x1xf32>
    %176 = math.rsqrt %175 : vector<16x1xf32>
    %177 = vector.broadcast %176 : vector<16x1xf32> to vector<16x128xf32>
    %178 = arith.mulf %173, %177 : vector<16x128xf32>
    %179 = vector.broadcast %158 : vector<1x128xf32> to vector<16x128xf32>
    %180 = arith.mulf %178, %179 : vector<16x128xf32>
    %181 = vector.broadcast %160 : vector<1x128xf32> to vector<16x128xf32>
    %182 = arith.addf %180, %181 : vector<16x128xf32>
    %183 = arith.truncf %182 : vector<16x128xf32> to vector<16x128xbf16>
    %c0_83 = arith.constant 0 : index
    %c0_84 = arith.constant 0 : index
    %c0_85 = arith.constant 0 : index
    %184 = vector.load %arg6[%c0_83, %c0_84, %c0_85] : memref<1x128x256xbf16, #tpu.memory_space<vmem>>, vector<1x128x256xbf16>
    %185 = vector.shape_cast %184 : vector<1x128x256xbf16> to vector<128x256xbf16>
    %cst_86 = arith.constant dense<0.000000e+00> : vector<16x256xf32>
    %186 = tpu.matmul %183, %185, %cst_86 {dimension_numbers = #tpu.dot_dimension_numbers<[1], [0], [0], [1], [0, 0, 1, 1], [], []>} : vector<16x128xbf16>, vector<128x256xbf16>, vector<16x256xf32> -> vector<16x256xf32>
    %c0_87 = arith.constant 0 : index
    %c0_88 = arith.constant 0 : index
    %c0_89 = arith.constant 0 : index
    %187 = vector.load %arg4[%c0_87, %c0_88, %c0_89] : memref<1x1x256xf32, #tpu.memory_space<vmem>>, vector<1x1x256xf32>
    %188 = vector.shape_cast %187 : vector<1x1x256xf32> to vector<1x256xf32>
    %189 = vector.broadcast %188 : vector<1x256xf32> to vector<16x256xf32>
    %190 = arith.addf %186, %189 : vector<16x256xf32>
    %cst_90 = arith.constant 5.000000e-01 : f32
    %191 = vector.broadcast %cst_90 : f32 to vector<16x256xf32>
    %192 = arith.mulf %191, %190 : vector<16x256xf32>
    %cst_91 = arith.constant 4.471500e-02 : f32
    %193 = vector.broadcast %cst_91 : f32 to vector<16x256xf32>
    %194 = arith.mulf %193, %190 : vector<16x256xf32>
    %195 = arith.mulf %194, %190 : vector<16x256xf32>
    %196 = arith.mulf %195, %190 : vector<16x256xf32>
    %197 = arith.addf %190, %196 : vector<16x256xf32>
    %cst_92 = arith.constant 0.797884583 : f32
    %198 = vector.broadcast %cst_92 : f32 to vector<16x256xf32>
    %199 = arith.mulf %198, %197 : vector<16x256xf32>
    %200 = math.tanh %199 : vector<16x256xf32>
    %cst_93 = arith.constant 1.000000e+00 : f32
    %201 = vector.broadcast %cst_93 : f32 to vector<16x256xf32>
    %202 = arith.addf %201, %200 : vector<16x256xf32>
    %203 = arith.mulf %192, %202 : vector<16x256xf32>
    %204 = arith.truncf %203 : vector<16x256xf32> to vector<16x256xbf16>
    %c0_94 = arith.constant 0 : index
    %c0_95 = arith.constant 0 : index
    %c0_96 = arith.constant 0 : index
    %205 = vector.load %arg7[%c0_94, %c0_95, %c0_96] : memref<1x256x128xbf16, #tpu.memory_space<vmem>>, vector<1x256x128xbf16>
    %206 = vector.shape_cast %205 : vector<1x256x128xbf16> to vector<256x128xbf16>
    %cst_97 = arith.constant dense<0.000000e+00> : vector<16x128xf32>
    %207 = tpu.matmul %204, %206, %cst_97 {dimension_numbers = #tpu.dot_dimension_numbers<[1], [0], [0], [1], [0, 0, 1, 1], [], []>} : vector<16x256xbf16>, vector<256x128xbf16>, vector<16x128xf32> -> vector<16x128xf32>
    %c0_98 = arith.constant 0 : index
    %c6 = arith.constant 6 : index
    %c0_99 = arith.constant 0 : index
    %208 = vector.load %arg3[%c0_98, %c6, %c0_99] : memref<1x11x128xf32, #tpu.memory_space<vmem>>, vector<1x1x128xf32>
    %209 = vector.shape_cast %208 : vector<1x1x128xf32> to vector<1x128xf32>
    %210 = vector.broadcast %209 : vector<1x128xf32> to vector<16x128xf32>
    %211 = arith.addf %207, %210 : vector<16x128xf32>
    %212 = arith.addf %182, %211 : vector<16x128xf32>
    %c0_100 = arith.constant 0 : index
    %c7 = arith.constant 7 : index
    %c0_101 = arith.constant 0 : index
    %213 = vector.load %arg3[%c0_100, %c7, %c0_101] : memref<1x11x128xf32, #tpu.memory_space<vmem>>, vector<1x1x128xf32>
    %214 = vector.shape_cast %213 : vector<1x1x128xf32> to vector<1x128xf32>
    %c0_102 = arith.constant 0 : index
    %c8 = arith.constant 8 : index
    %c0_103 = arith.constant 0 : index
    %215 = vector.load %arg3[%c0_102, %c8, %c0_103] : memref<1x11x128xf32, #tpu.memory_space<vmem>>, vector<1x1x128xf32>
    %216 = vector.shape_cast %215 : vector<1x1x128xf32> to vector<1x128xf32>
    %cst_104 = arith.constant dense<0.000000e+00> : vector<16xf32>
    %217 = vector.multi_reduction <add>, %212, %cst_104 [1] : vector<16x128xf32> to vector<16xf32>
    %218 = vector.shape_cast %217 : vector<16xf32> to vector<16x1xf32>
    %cst_105 = arith.constant 1.280000e+02 : f32
    %219 = vector.broadcast %cst_105 : f32 to vector<16x1xf32>
    %220 = arith.divf %218, %219 : vector<16x1xf32>
    %221 = vector.broadcast %220 : vector<16x1xf32> to vector<16x128xf32>
    %222 = arith.subf %212, %221 : vector<16x128xf32>
    %223 = arith.mulf %222, %222 : vector<16x128xf32>
    %cst_106 = arith.constant dense<0.000000e+00> : vector<16xf32>
    %224 = vector.multi_reduction <add>, %223, %cst_106 [1] : vector<16x128xf32> to vector<16xf32>
    %225 = vector.shape_cast %224 : vector<16xf32> to vector<16x1xf32>
    %cst_107 = arith.constant 1.280000e+02 : f32
    %226 = vector.broadcast %cst_107 : f32 to vector<16x1xf32>
    %227 = arith.divf %225, %226 : vector<16x1xf32>
    %228 = vector.broadcast %220 : vector<16x1xf32> to vector<16x128xf32>
    %229 = arith.subf %212, %228 : vector<16x128xf32>
    %cst_108 = arith.constant 9.99999996E-13 : f32
    %230 = vector.broadcast %cst_108 : f32 to vector<16x1xf32>
    %231 = arith.addf %227, %230 : vector<16x1xf32>
    %232 = math.rsqrt %231 : vector<16x1xf32>
    %233 = vector.broadcast %232 : vector<16x1xf32> to vector<16x128xf32>
    %234 = arith.mulf %229, %233 : vector<16x128xf32>
    %235 = vector.broadcast %214 : vector<1x128xf32> to vector<16x128xf32>
    %236 = arith.mulf %234, %235 : vector<16x128xf32>
    %237 = vector.broadcast %216 : vector<1x128xf32> to vector<16x128xf32>
    %238 = arith.addf %236, %237 : vector<16x128xf32>
    %c0_109 = arith.constant 0 : index
    %c0_110 = arith.constant 0 : index
    %239 = vector.load %arg12[%c0_109, %c0_110] : memref<16x128xf32, #tpu.memory_space<vmem>>, vector<16x128xf32>
    tpu.vector_store %arg12[%c0_109, %c0_110], %238 {strides = array<i32>} : memref<16x128xf32, #tpu.memory_space<vmem>>, vector<16x128xf32>,
    %c1_i32 = arith.constant 1 : i32
    %240 = arith.cmpi eq, %arg0, %c1_i32 : i32
    %241 = arith.extui %240 : i1 to i32
    %c0_i32_111 = arith.constant 0 : i32
    %242 = arith.cmpi ne, %241, %c0_i32_111 : i32
    scf.if %242 {
      %243 = tpu.iota {dimensions = array<i32: 0>} : vector<2x16xi32>
      %244 = tpu.iota {dimensions = array<i32: 1>} : vector<2x16xi32>
      %c8_i32_112 = arith.constant 8 : i32
      %245 = vector.broadcast %c8_i32_112 : i32 to vector<2x16xi32>
      %246 = arith.muli %243, %245 : vector<2x16xi32>
      %247 = arith.cmpi eq, %244, %246 : vector<2x16xi32>
      %cst_113 = arith.constant 1.000000e+00 : f32
      %cst_114 = arith.constant 0.000000e+00 : f32
      %248 = vector.broadcast %cst_113 : f32 to vector<2x16xf32>
      %249 = vector.broadcast %cst_114 : f32 to vector<2x16xf32>
      %250 = arith.select %247, %248, %249 : vector<2x16xi1>, vector<2x16xf32>
      %cst_115 = arith.constant dense<0.000000e+00> : vector<2x128xf32>
      %251 = tpu.matmul %250, %238, %cst_115 {dimension_numbers = #tpu.dot_dimension_numbers<[1], [0], [0], [1], [0, 0, 1, 1], [], []>} : vector<2x16xf32>, vector<16x128xf32>, vector<2x128xf32> -> vector<2x128xf32>
      %c0_116 = arith.constant 0 : index
      %c0_117 = arith.constant 0 : index
      %252 = vector.load %arg11[%c0_116, %c0_117] : memref<2x128xf32, #tpu.memory_space<vmem>>, vector<2x128xf32>
      tpu.vector_store %arg11[%c0_116, %c0_117], %251 {strides = array<i32>} : memref<2x128xf32, #tpu.memory_space<vmem>>, vector<2x128xf32>,
      %253 = arith.truncf %251 : vector<2x128xf32> to vector<2x128xbf16>
      %c0_118 = arith.constant 0 : index
      %c0_119 = arith.constant 0 : index
      %254 = vector.load %arg8[%c0_118, %c0_119] : memref<128x128xbf16, #tpu.memory_space<vmem>>, vector<128x128xbf16>
      %cst_120 = arith.constant dense<0.000000e+00> : vector<2x128xf32>
      %255 = tpu.matmul %253, %254, %cst_120 {dimension_numbers = #tpu.dot_dimension_numbers<[1], [0], [0], [1], [0, 0, 1, 1], [], []>} : vector<2x128xbf16>, vector<128x128xbf16>, vector<2x128xf32> -> vector<2x128xf32>
      %c0_121 = arith.constant 0 : index
      %c0_122 = arith.constant 0 : index
      %256 = vector.load %arg9[%c0_121, %c0_122] : memref<1x128xf32, #tpu.memory_space<vmem>>, vector<1x128xf32>
      %257 = vector.broadcast %256 : vector<1x128xf32> to vector<2x128xf32>
      %258 = arith.addf %255, %257 : vector<2x128xf32>
      %c0_123 = arith.constant 0 : index
      %c0_124 = arith.constant 0 : index
      %259 = vector.load %arg10[%c0_123, %c0_124] : memref<2x128xf32, #tpu.memory_space<vmem>>, vector<2x128xf32>
      tpu.vector_store %arg10[%c0_123, %c0_124], %258 {strides = array<i32>} : memref<2x128xf32, #tpu.memory_space<vmem>>, vector<2x128xf32>,
    } else {
    }
    return
  }
  func.func @transform_0(%arg0: i32, %arg1: memref<2xi32, #tpu.memory_space<smem>>) -> (i32, i32) {
    %c0_i32 = arith.constant 0 : i32
    %c0_i32_0 = arith.constant 0 : i32
    %c0_i32_1 = arith.constant 0 : i32
    return %c0_i32, %c0_i32_0 : i32, i32
  }
  func.func @transform_1(%arg0: i32, %arg1: memref<2xi32, #tpu.memory_space<smem>>) -> (i32, i32, i32) {
    %c0_i32 = arith.constant 0 : i32
    %c0_i32_0 = arith.constant 0 : i32
    %c0_i32_1 = arith.constant 0 : i32
    return %arg0, %c0_i32, %c0_i32_0 : i32, i32, i32
  }
  func.func @transform_2(%arg0: i32, %arg1: memref<2xi32, #tpu.memory_space<smem>>) -> (i32, i32, i32) {
    %c0_i32 = arith.constant 0 : i32
    %c0_i32_0 = arith.constant 0 : i32
    %c0_i32_1 = arith.constant 0 : i32
    return %arg0, %c0_i32, %c0_i32_0 : i32, i32, i32
  }
  func.func @transform_3(%arg0: i32, %arg1: memref<2xi32, #tpu.memory_space<smem>>) -> (i32, i32, i32, i32) {
    %c0_i32 = arith.constant 0 : i32
    %c0_i32_0 = arith.constant 0 : i32
    %c0_i32_1 = arith.constant 0 : i32
    %c0_i32_2 = arith.constant 0 : i32
    return %arg0, %c0_i32, %c0_i32_0, %c0_i32_1 : i32, i32, i32, i32
  }
  func.func @transform_4(%arg0: i32, %arg1: memref<2xi32, #tpu.memory_space<smem>>) -> (i32, i32, i32) {
    %c0_i32 = arith.constant 0 : i32
    %c0_i32_0 = arith.constant 0 : i32
    %c0_i32_1 = arith.constant 0 : i32
    return %arg0, %c0_i32, %c0_i32_0 : i32, i32, i32
  }
  func.func @transform_5(%arg0: i32, %arg1: memref<2xi32, #tpu.memory_space<smem>>) -> (i32, i32, i32) {
    %c0_i32 = arith.constant 0 : i32
    %c0_i32_0 = arith.constant 0 : i32
    %c0_i32_1 = arith.constant 0 : i32
    return %arg0, %c0_i32, %c0_i32_0 : i32, i32, i32
  }
  func.func @transform_6(%arg0: i32, %arg1: memref<2xi32, #tpu.memory_space<smem>>) -> (i32, i32) {
    %c0_i32 = arith.constant 0 : i32
    %c0_i32_0 = arith.constant 0 : i32
    %c0_i32_1 = arith.constant 0 : i32
    return %c0_i32, %c0_i32_0 : i32, i32
  }
  func.func @transform_7(%arg0: i32, %arg1: memref<2xi32, #tpu.memory_space<smem>>) -> (i32, i32) {
    %c0_i32 = arith.constant 0 : i32
    %c0_i32_0 = arith.constant 0 : i32
    %c0_i32_1 = arith.constant 0 : i32
    return %c0_i32, %c0_i32_0 : i32, i32
  }
  func.func @transform_8(%arg0: i32, %arg1: memref<2xi32, #tpu.memory_space<smem>>) -> (i32, i32) {
    %c0_i32 = arith.constant 0 : i32
    %c0_i32_0 = arith.constant 0 : i32
    %c0_i32_1 = arith.constant 0 : i32
    return %c0_i32, %c0_i32_0 : i32, i32
  }
  func.func @transform_9(%arg0: i32, %arg1: memref<2xi32, #tpu.memory_space<smem>>) -> (i32, i32) {
    %c0_i32 = arith.constant 0 : i32
    %c0_i32_0 = arith.constant 0 : i32
    %c0_i32_1 = arith.constant 0 : i32
    return %c0_i32, %c0_i32_0 : i32, i32
  }
}

</mosaic_0001>

<bundles_post_ra>
// kernel: tpu_custom_call.1
= control target key start
LH: loop header
LB: loop body
LE: loop exit
PB: predicated region body
PF: predicated region fallthrough
CT: control target
= control target key end

     0   :  { %s4428_s0 = inlined_call_operand.hbm [shape: s32[2], index: 0, kind: input, shape index: {}]   ;;  %s4429_s1 = inlined_call_operand.vmem [shape: f32[16,128], index: 1, kind: input, shape index: {}]   ;;  %s4430_s2 = inlined_call_operand.vmem [shape: f32[2,11,128], index: 2, kind: input, shape index: {}]   ;;  %s4431_s3 = inlined_call_operand.hbm [shape: f32[2,1,256], index: 3, kind: input, shape index: {}]   ;;  %s4432_s4 = inlined_call_operand.hbm [shape: bf16[2,4,128,128], index: 4, kind: input, shape index: {}]   ;;  %s4433_s5 = inlined_call_operand.hbm [shape: bf16[2,128,256], index: 5, kind: input, shape index: {}]   ;;  %s4434_s6 = inlined_call_operand.hbm [shape: bf16[2,256,128], index: 6, kind: input, shape index: {}]   ;;  %s4435_s7 = inlined_call_operand.vmem [shape: bf16[128,128], index: 7, kind: input, shape index: {}]   ;;  %s4436_s8 = inlined_call_operand.vmem [shape: f32[1,128], index: 8, kind: input, shape index: {}]   ;;  %s4437_s9 = inlined_call_operand.hbm [shape: f32[2,128], index: 9, kind: output, shape index: {0}]   ;;  %s4438_s10 = inlined_call_operand.hbm [shape: f32[2,128], index: 10, kind: output, shape index: {1}]  }
   0x1   :  { %4445 = sst [smem:[#allocation24_spill]] %s4431_s3  ;;  %s3520_s15 = scalar_lea.hbm %s4428_s0, 16 }
   0x2   :  { %4446 = sst [smem:[#allocation25_spill]] %s4432_s4  ;;  %p3521_p0 = scmp.ne.s32.totalorder %s4428_s0, %s3520_s15 }
   0x3   :  { %p3524_p1 = scmp.lt.u32.totalorder %s3520_s15, %s4428_s0 }
   0x5   :  { %p3526_p2 = pnand %p3524_p1, %p3521_p0 }
   0x7   :  { %3529 = shalt.err (!%p3526_p2)  }
   0x8   :  { %s3756_s20 = smov [#allocation4]  }
   0x9   :  { %17 = dma.hbm_to_smem %s4428_s0, 16, %s3756_s20, [#allocation3] }
   0xa   :  { %3718 = dma.done.wait [#allocation3], 16 }
   0xb   :  { %3719 = vsyncadd [#allocation3], 4294967280 }
   0xc   :  { %19 = sfence }
   0xd   :  { %20 = vsyncpa [#allocation6], 0 }
   0xe   :  { %22 = vsyncpa [#allocation6 + $0x1], 0 }
   0xf   :  { %23 = vsyncpa [#allocation9], 0 }
  0x10   :  { %25 = vsyncpa [#allocation9 + $0x1], 0 }
  0x11   :  { %26 = vsyncpa [#allocation12], 0 }
  0x12   :  { %28 = vsyncpa [#allocation12 + $0x1], 0 }
  0x13   :  { %29 = vsyncpa [#allocation7], 0 }
  0x14   :  { %30 = vsyncpa [#allocation15], 0  ;;  %s3844_s23 = smov 0   ;;  %s3846_s24 = smov 0  }
  0x15   :  { %s3848_s25 = smov 0   ;;  %s3850_s26 = smov 0  }
  0x16 LB: > { %4447 = sst [smem:[#allocation22_spill]] %s3750_s25  ;;  %s3863_s0 = sadd.s32 4294967295, %s3754_s26   ;;  %s3754_s26 = sphi %s3850_s26, %s4466_s26   ;;  %s3750_s25 = sphi %s3848_s25, %s4463_s25   ;;  %s3746_s24 = sphi %s3846_s24, %s4465_s24   ;;  %s3742_s23 = sphi %s3844_s23, %s4464_s23  }
  0x17   : > { %s3866_s27 = sadd.s32 1, %s3754_s26   ;;  %s90_s29 = sadd.s32 1, %s3750_s25 }
  0x18   : > { %s87_s28 = ssub.s32 %s3754_s26, %s3866_s27  ;;  %p97_p4 = scmp.ne.s32.totalorder %s3750_s25, %s3746_s24 }
  0x19   : > { %p88_p3 = scmp.eq.s32.totalorder %s87_s28, 0  ;;  %p98_p5 = scmp.eq.s32.totalorder %s3754_s26, 0 }
  0x1a   : > { %p103_p6 = scmp.ne.s32.totalorder %s3746_s24, %s3742_s23  ;;  %p104_p8 = scmp.eq.s32.totalorder %s3863_s0, 0 }
  0x1b   : > { %s3876_s30 = scalar_select %p88_p3, %s3750_s25, %s90_s29  }
  0x1c   : > { %p99_p7 = por %p98_p5, %p97_p4  ;;  %p3304_p9 = scmp.lt.s32.totalorder %s3754_s26, 2 }
  0x1d   : > { %4448 = sst [smem:[#allocation23_spill]] %s3876_s30  ;;  %p3880_p10 = por %p104_p8, %p103_p6 }
  0x1e   : > { %s3885_s12 = sand.u32 1, %s3750_s25   ;;  %p3887_p11 = pnand %p3304_p9, %p99_p7 }
  0x1f   : > { %s4449_s11 = scalar_select %p3880_p10, 1, 0 }
  0x20   : > { %s4450_s13 = scalar_select %p3887_p11, 1, 0 }
  0x21   : > { %s325_s14 = sand.u32 1, %s3754_s26   ;;  %s2761_s15 = sshll.u32 %s3885_s12, 8 }
  0x22   : > { %s2948_s16 = sshll.u32 %s3754_s26, 12  ;;  %s329_s17 = scalar_lea.vmem [#allocation8], %s2761_s15 }
  0x23   : > { %s336_s18 = sshll.u32 %s329_s17, 4  ;;  %s4451_s4 = sld [smem:[#allocation25_spill]]  ;;  %s3899_s18 = int_to_ptr.vmem [resolvable:$true] %s336_s18 }
  0x24   : > { %s3901_s22 = scalar_lea.sflag [#allocation9], %s325_s14  ;;  %p3907_p13 = pneg %p3887_p11 }
  0x29   : > { %s3897_s21 = scalar_lea.hbm %s4451_s4, %s2948_s16  ;;  %s3535_s16 = scalar_lea.hbm %s4451_s4, 8192 }
  0x2a   : > { %s3530_s23 = scalar_lea.hbm %s3897_s21, 4096  ;;  %p3536_p2 = scmp.lt.u32.totalorder %s3897_s21, %s4451_s4 }
  0x2b   : > { %p3531_p12 = scmp.ne.s32.totalorder %s3897_s21, %s3530_s23  ;;  %p3537_p3 = scmp.lt.u32.totalorder %s3535_s16, %s3530_s23 }
  0x2c   : > { %p3539_p5 = scmp.lt.u32.totalorder %s3530_s23, %s3897_s21 }
  0x2d   : > { %p3533_p0 = pnand %p3907_p13, %p3531_p12  ;;  %p3538_p4 = por %p3537_p3, %p3536_p2 }
  0x2f   : > { %p3534_p1 = pneg %p3533_p0  ;;  %p3540_p6 = por %p3539_p5, %p3538_p4 }
  0x31   : > { %p3541_p7 = pnand %p3540_p6, %p3534_p1 }
  0x33   : > { %3544 = shalt.err (!%p3541_p7)
}
  0x34   : > { %s3545_s14 = scalar_lea.vmem %s3899_s18, 4096  ;;  %s3757_s20 = smov [#allocation8]  }
  0x35   : > { %p3546_p8 = scmp.ne.s32.totalorder %s3899_s18, %s3545_s14  ;;  %s3550_s29 = sshll.u32 %s3757_s20, 4  ;;  %s3551_s29 = int_to_ptr.vmem [resolvable:$false] %s3550_s29 }
  0x36   : > { %s3552_s15 = scalar_lea.vmem %s3551_s29, 8192  ;;  %p3553_p0 = scmp.lt.s32.totalorder %s3899_s18, %s3551_s29 }
  0x37   : > { %p3548_p9 = pnand %p3546_p8, %p3907_p13  ;;  %p3554_p10 = scmp.lt.s32.totalorder %s3552_s15, %s3545_s14 }
  0x39   : > { %p3549_p12 = pneg %p3548_p9  ;;  %p3555_p2 = por %p3554_p10, %p3553_p0 }
  0x3b   : > { %p3556_p3 = pnand %p3555_p2, %p3549_p12 }
  0x3d   : > { %3559 = shalt.err (!%p3556_p3)
}
  0x3e   : > { %s4440_s23 = smov 64   ;;  %s4441_s16 = smov 4  }
  0x3f   : > { %3297 = dma.hbm_to_vmem [thread:$0]  (!%p3887_p11), %s3897_s21, 4096, %s3899_s18, %s3901_s22, %s4440_s23, %s4440_s23, %s4441_s16  }
  0x40   : > { %p2770_p10 = scmp.ge.s32.totalorder %s3754_s26, 1  ;;  %p386_p1 = scmp.lt.s32.totalorder %s3754_s26, 3 }
  0x41   : > { %s2758_s17 = sshll.u32 %s3885_s12, 1  ;;  %s2947_s14 = sshll.u32 %s3754_s26, 5 }
  0x42   : > { %p3937_p4 = pnand %p2770_p10, %p386_p1  ;;  %s310_s20 = scalar_lea.vmem [#allocation5], %s2758_s17 }
  0x43   : > { %s318_s29 = sshll.u32 %s310_s20, 4  ;;  %s4454_s3 = sld [smem:[#allocation24_spill]]  ;;  %s319_s29 = int_to_ptr.vmem [resolvable:$true] %s318_s29 }
  0x44   : > { %s4453_s19 = scalar_select %p3937_p4, 1, 0 }
  0x45   : > { %s307_s18 = scalar_lea.sflag [#allocation6], %s3885_s12 }
  0x49   : > { %s3945_s30 = scalar_lea.hbm %s4454_s3, %s2947_s14  ;;  %s3565_s17 = scalar_lea.hbm %s4454_s3, 64 }
  0x4a   : > { %s3560_s21 = scalar_lea.hbm %s3945_s30, 32  ;;  %p3566_p8 = scmp.lt.u32.totalorder %s3945_s30, %s4454_s3 }
  0x4b   : > { %p3561_p5 = scmp.ne.s32.totalorder %s3945_s30, %s3560_s21  ;;  %p3567_p9 = scmp.lt.u32.totalorder %s3565_s17, %s3560_s21 }
  0x4c   : > { %p3569_p0 = scmp.lt.u32.totalorder %s3560_s21, %s3945_s30 }
  0x4d   : > { %p3563_p6 = pnand %p3561_p5, %p3907_p13  ;;  %p3568_p12 = por %p3567_p9, %p3566_p8 }
  0x4f   : > { %p3564_p7 = pneg %p3563_p6  ;;  %p3570_p2 = por %p3569_p0, %p3568_p12 }
  0x51   : > { %p3571_p3 = pnand %p3570_p2, %p3564_p7 }
  0x53   : > { %3574 = shalt.err (!%p3571_p3)
}
  0x54   : > { %s3575_s4 = scalar_lea.vmem %s319_s29, 32  ;;  %s3760_s14 = smov [#allocation5]  }
  0x55   : > { %p3576_p10 = scmp.ne.s32.totalorder %s319_s29, %s3575_s4  ;;  %s3580_s15 = sshll.u32 %s3760_s14, 4  ;;  %s3581_s15 = int_to_ptr.vmem [resolvable:$false] %s3580_s15 }
  0x56   : > { %s3582_s23 = scalar_lea.vmem %s3581_s15, 64  ;;  %p3583_p6 = scmp.lt.s32.totalorder %s319_s29, %s3581_s15 }
  0x57   : > { %p3578_p1 = pnand %p3576_p10, %p3907_p13  ;;  %p3584_p4 = scmp.lt.s32.totalorder %s3582_s23, %s3575_s4 }
  0x59   : > { %p3579_p5 = pneg %p3578_p1  ;;  %p3585_p11 = por %p3584_p4, %p3583_p6 }
  0x5b   : > { %p3586_p8 = pnand %p3585_p11, %p3579_p5 }
  0x5d   : > { %3589 = shalt.err (!%p3586_p8)
}
  0x5e   : > { %p4455_p9 = scmp.ne.s32.totalorder %s4450_s13, 0  ;;  %s2764_s25 = sshll.u32 %s3885_s12, 7 }
  0x5f   : > { %s2949_s16 = sshll.u32 %s3754_s26, 11  ;;  %s350_s4 = scalar_lea.vmem [#allocation10], %s2764_s25 }
  0x60   : > { %3294 = dma.hbm_to_vmem [thread:$0]  (!%p4455_p9), %s3945_s30, 32, %s319_s29, %s307_s18  }
  0x61   : > { %s3972_s20 = scalar_lea.hbm %s4433_s5, %s2949_s16  ;;  %s357_s14 = sshll.u32 %s350_s4, 4  ;;  %s3976_s14 = int_to_ptr.vmem [resolvable:$true] %s357_s14 }
  0x62   : > { %s3590_s15 = scalar_lea.hbm %s3972_s20, 2048  ;;  %s3595_s18 = scalar_lea.hbm %s4433_s5, 4096 }
  0x63   : > { %p3591_p11 = scmp.ne.s32.totalorder %s3972_s20, %s3590_s15  ;;  %p3596_p12 = scmp.lt.u32.totalorder %s3972_s20, %s4433_s5 }
  0x64   : > { %p3597_p0 = scmp.lt.u32.totalorder %s3595_s18, %s3590_s15  ;;  %p3599_p3 = scmp.lt.u32.totalorder %s3590_s15, %s3972_s20 }
  0x65   : > { %p3593_p4 = pnand %p3591_p11, %p3907_p13 }
  0x66   : > { %p3598_p2 = por %p3597_p0, %p3596_p12 }
  0x67   : > { %p3594_p7 = pneg %p3593_p4 }
  0x68   : > { %p3600_p10 = por %p3599_p3, %p3598_p2 }
  0x6a   : > { %p3601_p1 = pnand %p3600_p10, %p3594_p7 }
  0x6c   : > { %3604 = shalt.err (!%p3601_p1)
}
  0x6d   : > { %s3605_s17 = scalar_lea.vmem %s3976_s14, 2048  ;;  %s3761_s4 = smov [#allocation10]  }
  0x6e   : > { %p3606_p5 = scmp.ne.s32.totalorder %s3976_s14, %s3605_s17  ;;  %s3610_s30 = sshll.u32 %s3761_s4, 4  ;;  %s3611_s30 = int_to_ptr.vmem [resolvable:$false] %s3610_s30 }
  0x6f   : > { %s3612_s29 = scalar_lea.vmem %s3611_s30, 4096  ;;  %p3613_p11 = scmp.lt.s32.totalorder %s3976_s14, %s3611_s30 }
  0x70   : > { %p3608_p6 = pnand %p3606_p5, %p3907_p13  ;;  %p3614_p4 = scmp.lt.s32.totalorder %s3612_s29, %s3605_s17 }
  0x72   : > { %p3609_p8 = pneg %p3608_p6  ;;  %p3615_p12 = por %p3614_p4, %p3613_p11 }
  0x74   : > { %p3616_p0 = pnand %p3615_p12, %p3609_p8 }
  0x76   : > { %3619 = shalt.err (!%p3616_p0)
}
  0x77   : > { %s3762_s15 = smov 128   ;;  %s3763_s18 = smov 8  }
  0x78   : > { %3300 = dma.hbm_to_vmem [thread:$0]  (!%p4455_p9), %s3972_s20, 2048, %s3976_s14, %s3901_s22, %s3762_s15, %s3762_s15, %s3763_s18  }
  0x79   : > { %s4005_s17 = scalar_lea.hbm %s4434_s6, %s2949_s16  ;;  %s371_s4 = scalar_lea.vmem [#allocation11], %s2764_s25 }
  0x7a   : > { %s378_s30 = sshll.u32 %s371_s4, 4  ;;  %s368_s29 = scalar_lea.sflag [#allocation12], %s3885_s12  ;;  %s4009_s30 = int_to_ptr.vmem [resolvable:$true] %s378_s30 }
  0x7b   : > { %s3620_s3 = scalar_lea.hbm %s4005_s17, 2048  ;;  %s3625_s16 = scalar_lea.hbm %s4434_s6, 4096 }
  0x7c   : > { %p3621_p7 = scmp.ne.s32.totalorder %s4005_s17, %s3620_s3  ;;  %p3626_p10 = scmp.lt.u32.totalorder %s4005_s17, %s4434_s6 }
  0x7d   : > { %p3627_p1 = scmp.lt.u32.totalorder %s3625_s16, %s3620_s3  ;;  %p3629_p6 = scmp.lt.u32.totalorder %s3620_s3, %s4005_s17 }
  0x7e   : > { %p3623_p2 = pnand %p3621_p7, %p3907_p13 }
  0x7f   : > { %p3628_p5 = por %p3627_p1, %p3626_p10 }
  0x80   : > { %p3624_p3 = pneg %p3623_p2 }
  0x81   : > { %p3630_p8 = por %p3629_p6, %p3628_p5 }
  0x83   : > { %p3631_p11 = pnand %p3630_p8, %p3624_p3 }
  0x85   : > { %3634 = shalt.err (!%p3631_p11)
}
  0x86   : > { %s3635_s25 = scalar_lea.vmem %s4009_s30, 2048  ;;  %s3764_s15 = smov [#allocation11]  }
  0x87   : > { %p3636_p4 = scmp.ne.s32.totalorder %s4009_s30, %s3635_s25  ;;  %s3640_s18 = sshll.u32 %s3764_s15, 4  ;;  %s3641_s18 = int_to_ptr.vmem [resolvable:$false] %s3640_s18 }
  0x88   : > { %s3642_s23 = scalar_lea.vmem %s3641_s18, 4096  ;;  %p3643_p7 = scmp.lt.s32.totalorder %s4009_s30, %s3641_s18 }
  0x89   : > { %p3638_p12 = pnand %p3636_p4, %p3907_p13  ;;  %p3644_p2 = scmp.lt.s32.totalorder %s3642_s23, %s3635_s25 }
  0x8b   : > { %p3639_p0 = pneg %p3638_p12  ;;  %p3645_p10 = por %p3644_p2, %p3643_p7 }
  0x8d   : > { %p3646_p1 = pnand %p3645_p10, %p3639_p0 }
  0x8f   : > { %3649 = shalt.err (!%p3646_p1)
}
  0x90   : > { %s4456_s3 = smov 4   ;;  %s4457_s21 = smov 64  }
  0x91   : > { %3303 = dma.hbm_to_vmem [thread:$0]  (!%p4455_p9), %s4005_s17, 2048, %s4009_s30, %s368_s29, %s4457_s21, %s4457_s21, %s4456_s3  }
  0x92   : > { %p4458_p13 = scmp.ne.s32.totalorder %s4453_s19, 0 }
  0x93   : > { %s392_s28 = sand.u32 (!%p4458_p13), 1, %s3746_s24   ;;  %p4459_p3 = scmp.ne.s32.totalorder (!%p4458_p13), %s4449_s11, 0 }
  0x94   : > { %390 = sbr.rel (%p4458_p13) target bundleno = 5135 (0x140f), region = 52  ;;  %s2771_s4 = sshll.u32 (!%p4458_p13), %s392_s28, 1 }
  0x95   : > { %s393_s26 = scalar_lea.sflag (!%p4458_p13), [#allocation6], %s392_s28  ;;  %s4041_s22 = scalar_lea.vmem (!%p4458_p13), [#allocation5], %s2771_s4 }
  0x9b   : > { %3721 = dma.done.wait (%p4459_p3), %s393_s26, 32  }
  0x9c   : > { %3723 = vsyncadd (%p4459_p3), %s393_s26, 4294967264  ;;  %s401_s12 = sand.u32 1, %s3863_s0   ;;  %s2772_s13 = sshll.u32 %s392_s28, 8 }
  0x9d   : > { %s402_s17 = scalar_lea.sflag [#allocation9], %s401_s12  ;;  %s4048_s30 = scalar_lea.vmem [#allocation8], %s2772_s13 }
  0x9e   : > { %3725 = dma.done.wait (%p4459_p3), %s402_s17, 6144  }
  0x9f   : > { %3727 = vsyncadd (%p4459_p3), %s402_s17, 4294961152  ;;  %s2773_s19 = sshll.u32 %s392_s28, 7  ;;  %s420_s16 = scalar_lea.sflag [#allocation12], %s392_s28 }
  0xa0   : > { %s4054_s29 = scalar_lea.vmem [#allocation10], %s2773_s19  ;;  %s4056_s20 = scalar_lea.vmem [#allocation11], %s2773_s19 }
  0xa1   : > { %3729 = dma.done.wait (%p4459_p3), %s420_s16, 2048  }
  0xa2   : > { %3731 = vsyncadd (%p4459_p3), %s420_s16, 4294965248  ;;  %p473_p9 = scmp.lt.s32.totalorder %s3863_s0, 1  ;;  %p2777_p5 = scmp.ne.s32.totalorder %s3863_s0, 0 }
  0xa3   : > { %v483_v0 = vld [vmem:[%s4429_s1] sm:$0xff] (!%p2777_p5)  ;;  %v484_v1 = vld [vmem:[%s4429_s1 + $0x8] sm:$0xff] (!%p2777_p5) }
  0xa4   : > { %s474_s14 = scalar_select %p473_p9, %s3863_s0, 1 }
  0xa5   : > { %482 = sbr.rel (%p2777_p5) target bundleno = 481 (0x1e1), region = 72  ;;  %487 = vadd.xlane.f32.xlu0 (!%p2777_p5), %v483_v0 }
  0xa6   : > { %s2951_s25 = sshll.u32 %s474_s14, 4 }
  0xa7   : > { %s4067_s23 = scalar_lea.vmem %s4430_s2, %s2951_s25 }
  0xa8   : > { %v2778_v17 = vld [vmem:[%s4067_s23 + $0x9] ss:$0 sm:$0xff] (!%p2777_p5)  ;;  %v2779_v19 = vld [vmem:[%s4067_s23 + $0xa] ss:$0 sm:$0xff] (!%p2777_p5) }
  0xa9   : > { %489 = vadd.xlane.f32.xlu0 (!%p2777_p5), %v484_v1 }
 0x132   : > { %v488_v2 = vpop.xlane.xlu0 %487 }
 0x133   : > { %v492_v3 = vmul.f32 0.0078125, %v488_v2 }
 0x135   : > { %v494_v4 = vsub.f32 %v483_v0, %v492_v3 }
 0x136   : > { %v490_v5 = vpop.xlane.xlu0 %489 }
 0x137   : > { %v493_v6 = vmul.f32 0.0078125, %v490_v5  ;;  %v496_v7 = vmul.f32 %v494_v4, %v494_v4 }
 0x139   : > { %v495_v8 = vsub.f32 %v484_v1, %v493_v6  ;;  %498 = vadd.xlane.f32.xlu1 %v496_v7 }
 0x13b   : > { %v497_v9 = vmul.f32 %v495_v8, %v495_v8 }
 0x13d   : > { %500 = vadd.xlane.f32.xlu1 %v497_v9 }
 0x1c6   : > { %v499_v10 = vpop.xlane.xlu1 %498 }
 0x1c7   : > { %v502_v11 = vmul.f32 0.0078125, %v499_v10 }
 0x1c9   : > { %v504_v12 = vadd.f32 1e-12, %v502_v11 }
 0x1ca   : > { %v501_v13 = vpop.xlane.xlu1 %500 }
 0x1cb   : > { %3358 = vrsqrt.f32 %v504_v12  ;;  %v503_v14 = vmul.f32 0.0078125, %v501_v13 }
 0x1cd   : > { %v505_v15 = vadd.f32 1e-12, %v503_v14 }
 0x1cf   : > { %3360 = vrsqrt.f32 %v505_v15 }
 0x1d5   : > { %v3359_v16 = vpop.eup %3358 }
 0x1d6   : > { %v508_v18 = vmul.f32 %v3359_v16, %v494_v4 }
 0x1d8   : > { %v514_v20 = vmul.f32 %v2778_v17, %v508_v18 }
 0x1d9   : > { %v3361_v21 = vpop.eup %3360 }
 0x1da   : > { %v520_v22 = vadd.f32 %v2779_v19, %v514_v20  ;;  %v509_v23 = vmul.f32 %v3361_v21, %v495_v8 }
 0x1dc   : > { %522 = vst [vmem:[#allocation2] sm:$0xff] %v520_v22  ;;  %v515_v24 = vmul.f32 %v2778_v17, %v509_v23 }
 0x1de   : > { %v521_v25 = vadd.f32 %v2779_v19, %v515_v24 }
 0x1e0   : > { %523 = vst [vmem:[#allocation2 + $0x8] sm:$0xff] %v521_v25 }
 0x1e1 PF: > { %v3392_v26 = vld [vmem:[%s4048_s30 + $0x40] sm:$0xff]   ;;  %v3765_v27 = vmov 0.0   ;;  %v3393_v28 = vld [vmem:[%s4048_s30 + $0x48] sm:$0xff]   ;;  %vm3766_vm0 = vmmov 0   ;;  %v3395_v31 = vld [vmem:[%s4048_s30 + $0x50] sm:$0xff]   ;;  %vm895_vm1 = vcmask 261120   ;;  %v526_v7 = vlaneseq }
 0x1e2   : > { %3077 = vmatprep.subr.bf16.mxu1 %v3765_v27  ;;  %3057 = vmatprep.subr.bf16.mxu0 %v3765_v27  ;;  %v3394_v29 = vld [vmem:[%s4048_s30] sm:$0xff]   ;;  %v3396_v30 = vld [vmem:[%s4048_s30 + $0x8] sm:$0xff]   ;;  %v3398_v32 = vld [vmem:[%s4048_s30 + $0x10] sm:$0xff]   ;;  %s3767_s4 = smov 96   ;;  %s2780_s26 = sld [smem:[#allocation4 + $0x1]]  ;;  %v3768_v13 = vmov -10000.0  }
 0x1e3   : > { %3078 = vmatpush3.bf16.msra.mxu1 %v3392_v26  ;;  %3093 = vmatprep.mubr.msk.bf16.mxu1 %vm3766_vm0, %v3765_v27  ;;  %v3397_v33 = vld [vmem:[%s4048_s30 + $0x58] sm:$0xff]   ;;  %v3399_v35 = vld [vmem:[%s4048_s30 + $0x60] sm:$0xff]   ;;  %v3401_v36 = vld [vmem:[%s4048_s30 + $0x68] sm:$0xff]   ;;  %s538_s12 = sld [smem:[#allocation4]]  ;;  %v4166_v8 = vand.u32 127, %v526_v7  ;;  %vm987_vm7 = vcmask 130048  }
 0x1e4   : > { %3079 = vmatprep.subr.bf16.mxu1 %v3765_v27  ;;  %3073 = vmatprep.mubr.msk.bf16.mxu0 %vm3766_vm0, %v3765_v27  ;;  %v3400_v34 = vld [vmem:[%s4048_s30 + $0x18] sm:$0xff]   ;;  %v3402_v37 = vld [vmem:[%s4048_s30 + $0x20] sm:$0xff]   ;;  %v3404_v38 = vld [vmem:[%s4048_s30 + $0x28] sm:$0xff]   ;;  %s3769_s17 = smov 64   ;;  %s3770_s19 = smov 32  }
 0x1e5   : > { %3058 = vmatpush3.bf16.msra.mxu0 %v3394_v29  ;;  %v3403_v39 = vld [vmem:[%s4048_s30 + $0x70] sm:$0xff]   ;;  %v3405_v41 = vld [vmem:[%s4048_s30 + $0x78] sm:$0xff]   ;;  %v3408_v46 = vld [vmem:[%s4048_s30 + $0x80] sm:$0xff]   ;;  %vm552_vm3 = vcmp.ge.s32.totalorder %v4166_v8, 8  ;;  %p2930_p6 = scmp.ne.s32.totalorder %s3863_s0, 1 }
 0x1e6   : > { %3059 = vmatprep.subr.bf16.mxu0 %v3765_v27  ;;  %v3406_v40 = vld [vmem:[%s4048_s30 + $0x30] sm:$0xff]   ;;  %v3407_v44 = vld [vmem:[%s4048_s30 + $0x38] sm:$0xff]   ;;  %v3409_v47 = vld [vmem:[%s4048_s30 + $0x88] sm:$0xff]   ;;  %vm3773_vm8 = vmmov (!%p2930_p6), 0  }
 0x1e7   : > { %3080 = vmatpush3.bf16.msra.mxu1 %v3393_v28  ;;  %v4110_v42 = vld [vmem:[#allocation2] sm:$0xff]  ;;  %v4112_v43 = vld [vmem:[#allocation2 + $0x8] sm:$0xff]  ;;  %vm4136_vm2 = vmpackc.low %vm895_vm1, %vm895_vm1 }
 0x1e8   : > { %3081 = vmatprep.subr.bf16.mxu1 %v3765_v27  ;;  %v562_v45 = vpack.c.bf16 %v4112_v43, %v4110_v42  ;;  %v3410_v48 = vld [vmem:[%s4048_s30 + $0x90] sm:$0xff]   ;;  %v2806_v49 = vld [vmem:[%s4067_s23 + $0x1] ss:$0 sm:$0xff]  ;;  %v2781_v51 = vld [vmem:[%s4067_s23] ss:$0 sm:$0xff]  ;;  %s554_s13 = sadd.s32 8, %s2780_s26 }
 0x1e9   : > { %3060 = vmatpush3.bf16.msra.mxu0 %v3396_v30  ;;  %v3411_v55 = vld [vmem:[%s4048_s30 + $0x98] sm:$0xff]   ;;  %v3412_v2 = vld [vmem:[%s4048_s30 + $0xa0] sm:$0xff]   ;;  %v3413_v3 = vld [vmem:[%s4048_s30 + $0xa8] sm:$0xff]   ;;  %v555_v9 = vstv %s554_s13 }
 0x1ea   : > { %3061 = vmatprep.subr.bf16.mxu0 %v3765_v27  ;;  %v3414_v5 = vld [vmem:[%s4048_s30 + $0xb0] sm:$0xff]   ;;  %v3415_v6 = vld [vmem:[%s4048_s30 + $0xb8] sm:$0xff]   ;;  %v539_v10 = vstv %s538_s12  ;;  %vm556_vm4 = vcmp.lt.s32.totalorder %v4166_v8, %v555_v9  ;;  %v2831_v24 = vld [vmem:[%s4067_s23 + $0x2] ss:$0 sm:$0xff] }
 0x1eb   : > { %3082 = vmatpush3.bf16.msra.mxu1 %v3395_v31  ;;  %vm540_vm5 = vcmp.lt.s32.totalorder %v4166_v8, %v539_v10  ;;  %vm557_vm6 = vmand %vm552_vm3, %vm556_vm4 }
 0x1ec   : > { %3083 = vmatprep.subr.bf16.mxu1 %v3765_v27  ;;  %v4171_v14 = vsel %vm540_vm5, 0.0, %v3768_v13  ;;  %v4173_v17 = vsel %vm557_vm6, 0.0, %v3768_v13 }
 0x1ed   : > { %3062 = vmatpush3.bf16.msra.mxu0 %v3398_v32 }
 0x1ee   : > { %3063 = vmatprep.subr.bf16.mxu0 %v3765_v27 }
 0x1ef   : > { %3084 = vmatpush3.bf16.msra.mxu1 %v3397_v33 }
 0x1f0   : > { %3085 = vmatprep.subr.bf16.mxu1 %v3765_v27 }
 0x1f1   : > { %3064 = vmatpush3.bf16.msra.mxu0 %v3400_v34 }
 0x1f2   : > { %3065 = vmatprep.subr.bf16.mxu0 %v3765_v27 }
 0x1f3   : > { %3086 = vmatpush3.bf16.msra.mxu1 %v3399_v35 }
 0x1f4   : > { %3087 = vmatprep.subr.bf16.mxu1 %v3765_v27 }
 0x1f5   : > { %3066 = vmatpush3.bf16.msra.mxu0 %v3402_v37 }
 0x1f6   : > { %3067 = vmatprep.subr.bf16.mxu0 %v3765_v27 }
 0x1f7   : > { %3088 = vmatpush3.bf16.msra.mxu1 %v3401_v36 }
 0x1f8   : > { %3089 = vmatprep.subr.bf16.mxu1 %v3765_v27 }
 0x1f9   : > { %3068 = vmatpush3.bf16.msra.mxu0 %v3404_v38 }
 0x1fa   : > { %3069 = vmatprep.subr.bf16.mxu0 %v3765_v27 }
 0x1fb   : > { %3090 = vmatpush3.bf16.msra.mxu1 %v3403_v39 }
 0x1fc   : > { %3091 = vmatprep.subr.bf16.mxu1 %v3765_v27 }
 0x1fd   : > { %3070 = vmatpush3.bf16.msra.mxu0 %v3406_v40 }
 0x1fe   : > { %3071 = vmatprep.subr.bf16.mxu0 %v3765_v27 }
 0x1ff   : > { %3092 = vmatpush3.bf16.msra.mxu1 %v3405_v41 }
 0x201   : > { %3072 = vmatpush3.bf16.msra.mxu0 %v3407_v44 }
 0x202   : > { %3094 = vmatmul.mubr.bf16.vlgmr.msra.gmra.mrb[0].mxu1 %v562_v45  ;;  %3097 = vmatprep.subr.bf16.mxu0 %v3765_v27 }
 0x204   : > { %3074 = vmatmul.mubr.bf16.vlgmr.msra.gmra.mrb[0].mxu0 %v562_v45 }
 0x205   : > { %3113 = vmatprep.mubr.msk.bf16.mxu0 %vm3766_vm0, %v3765_v27  ;;  %3098 = vmatpush3.bf16.msra.mxu0 %v3408_v46 }
 0x206   : > { %3099 = vmatprep.subr.bf16.mxu0 %v3765_v27 }
 0x209   : > { %3100 = vmatpush3.bf16.msra.mxu0 %v3409_v47  ;;  %v3416_v47 = vld [vmem:[%s4048_s30 + $0xc0] sm:$0xff]  }
 0x20a   : > { %3101 = vmatprep.subr.bf16.mxu0 %v3765_v27 }
 0x20d   : > { %3102 = vmatpush3.bf16.msra.mxu0 %v3410_v48 }
 0x20e   : > { %3103 = vmatprep.subr.bf16.mxu0 %v3765_v27 }
 0x211   : > { %3104 = vmatpush3.bf16.msra.mxu0 %v3411_v55 }
 0x212   : > { %3105 = vmatprep.subr.bf16.mxu0 %v3765_v27 }
 0x215   : > { %3106 = vmatpush3.bf16.msra.mxu0 %v3412_v2 }
 0x216   : > { %3107 = vmatprep.subr.bf16.mxu0 %v3765_v27 }
 0x219   : > { %3108 = vmatpush3.bf16.msra.mxu0 %v3413_v3 }
 0x21a   : > { %3109 = vmatprep.subr.bf16.mxu0 %v3765_v27 }
 0x21d   : > { %3110 = vmatpush3.bf16.msra.mxu0 %v3414_v5 }
 0x21e   : > { %3111 = vmatprep.subr.bf16.mxu0 %v3765_v27 }
 0x221   : > { %3112 = vmatpush3.bf16.msra.mxu0 %v3415_v6 }
 0x222   : > { %3153 = vmatprep.subr.bf16.mxu0 %v3765_v27 }
 0x224   : > { %3114 = vmatmul.mubr.bf16.vlgmr.msra.gmra.mrb[4].mxu0 %v562_v45 }
 0x225   : > { %3157 = vmatprep.mubr.msk.bf16.mxu0 %vm3766_vm0, %v3765_v27  ;;  %3154 = vmatpush3.bf16.msra.mxu0 %v3416_v47 }
 0x226   : > { %3155 = vmatprep.subr.bf16.mxu0 %v3765_v27 }
 0x2d5   : > { %v777_v50 = vpop.f32.mrb[0].mxu1 }
 0x2d6   : > { %v3095_v52 = vpop.f32.mrb[1].mxu1  ;;  %v778_v56 = vadd.f32 %v2806_v49, %v777_v50 }
 0x2d7   : > { %v780_v53 = vpop.f32.mrb[2].mxu1  ;;  %v666_v54 = vpop.f32.mrb[0].mxu0 }
 0x2d8   : > { %v781_v57 = vadd.f32 %v2806_v49, %v780_v53  ;;  %v3096_v58 = vpop.f32.mrb[3].mxu1  ;;  %v4132_v59 = vadd.f32 %v2781_v51, %v666_v54  ;;  %v3075_v60 = vpop.f32.mrb[1].mxu0 }
 0x2d9   : > { %v669_v62 = vpop.f32.mrb[2].mxu0 }
 0x2da   : > { %v3232_v63 = vpack.c.bf16 %v781_v57, %v778_v56  ;;  %v3076_v0 = vpop.f32.mrb[3].mxu0  ;;  %1097 = vrot.lane.b32.xlu1 %v4132_v59, %s3767_s4  ;;  %3121 = vmatprep.mubr.msk.f32.mxu1 %vm895_vm1, %v4132_v59  ;;  %v4144_v1 = vpack.i.bf16 %v781_v57, %v778_v56  ;;  %v4154_v4 = vadd.f32 %v2781_v51, %v669_v62  ;;  %v3417_v56 = vld [vmem:[%s4048_s30 + $0xc8] sm:$0xff]  }
 0x2db   : > { %3156 = vmatpush3.bf16.msra.mxu0 %v3417_v56 }
 0x2dc   : > { %3234 = vmatprep.subr.msk.bf16.mxu1 %vm4136_vm2, %v3232_v63  ;;  %3175 = vmatprep.subr.bf16.mxu0 %v3765_v27 }
 0x2dd   : > { %3237 = vmatpush3.bf16.xpose.msk.msra.mxu1 %vm4136_vm2, %v3232_v63 }
 0x2e4   : > { %3122 = vmatmul.mubr.msk.f32.vlgmr.msra.gmra.mrb[4].mxu1 %vm895_vm1, %v4154_v4 }
 0x2f7   : > { %v888_v22 = vpop.f32.mrb[4].mxu0 }
 0x2f8   : > { %v3115_v23 = vpop.f32.mrb[5].mxu0  ;;  %v4180_v26 = vadd.f32 %v2831_v24, %v888_v22 }
 0x2f9   : > { %v891_v25 = vpop.f32.mrb[6].mxu0 }
 0x2fa   : > { %v892_v28 = vadd.f32 %v2831_v24, %v891_v25  ;;  %v3116_v29 = vpop.f32.mrb[7].mxu0 }
 0x2fc   : > { %v3238_v30 = vpack.c.bf16 %v892_v28, %v4180_v26  ;;  %v4209_v10 = vpack.i.bf16 %v892_v28, %v4180_v26 }
 0x2fe   : > { %3239 = vmatprep.subr.bf16.mxu1 %v3238_v30 }
 0x2ff   : > { %3241 = vmatpush3.bf16.msra.mxu1 %v3238_v30 }
 0x34c   : > { %v1098_v48 = vpop.permute.xlu1 %1097 }
 0x3b7   : > { %v3123_v11 = vpop.f32.mrb[4].mxu1 }
 0x3b8   : > { %v974_v12 = vpop.f32.mrb[5].mxu1  ;;  %v984_v15 = vmul.f32 0.17677669, %v3123_v11 }
 0x3b9   : > { %v983_v16 = vmul.f32 0.17677669, %v974_v12 }
 0x3ba   : > { %v986_v20 = vadd.f32 %v984_v15, %v4173_v17 }
 0x3bb   : > { %v985_v18 = vadd.f32 %v983_v16, %v4171_v14 }
 0x3bc   : > { %v991_v21 = vsel %vm987_vm7, %v986_v20, -inf }
 0x3bd   : > { %v988_v19 = vsel %vm987_vm7, %v985_v18, -inf }
 0x3be   : > { %989 = vmax.xlane.f32.xlu0 %v988_v19 }
 0x3c2   : > { %992 = vmax.xlane.f32.xlu0 %v991_v21 }
 0x3d8   : > { %3363 = vrot.lane.b32.xlu0 %v4144_v1, %s3767_s4 }
 0x44b   : > { %v990_v31 = vpop.xlane.xlu0 %989 }
 0x44c   : > { %v994_v32 = vsub.f32 %v985_v18, %v990_v31 }
 0x44e   : > { %v996_v35 = vmul.f32 1.442695, %v994_v32 }
 0x44f   : > { %v993_v33 = vpop.xlane.xlu0 %992 }
 0x450   : > { %v995_v34 = vsub.f32 %v986_v20, %v993_v33 }
 0x452   : > { %v998_v36 = vmul.f32 1.442695, %v995_v34 }
 0x453   : > { %v3364_v37 = vpop.permute.xlu0 %3363 }
 0x454   : > { %3464 = vpow2.f32 %v998_v36  ;;  %v3366_v38 = vunpack.i.h.bf16 %v3364_v37  ;;  %v3365_v39 = vunpack.i.l.bf16 %v3364_v37 }
 0x455   : > { %3466 = vpow2.f32 %v996_v35 }
 0x456   : > { %v3242_v40 = vpack.c.bf16 %v3366_v38, %v3365_v39  ;;  %v3418_v38 = vld [vmem:[%s4048_s30 + $0xd0] sm:$0xff]  }
 0x458   : > { %3244 = vmatprep.subr.msk.bf16.mxu1 %vm4136_vm2, %v3242_v40 }
 0x45e   : > { %v3465_v41 = vpop.eup %3464 }
 0x45f   : > { %v1003_v44 = vsel %vm987_vm7, %v3465_v41, 0.0  ;;  %v3467_v45 = vpop.eup %3466 }
 0x460   : > { %1004 = vadd.xlane.f32.xlu1 %v1003_v44  ;;  %v1000_v46 = vsel %vm987_vm7, %v3467_v45, 0.0  ;;  %v3419_v44 = vld [vmem:[%s4048_s30 + $0xd8] sm:$0xff]  }
 0x464   : > { %1001 = vadd.xlane.f32.xlu1 %v1000_v46 }
 0x475   : > { %1099 = vrot.lane.b32.xlu1 %v4154_v4, %s3767_s4 }
 0x4ed   : > { %v1005_v49 = vpop.xlane.xlu1 %1004 }
 0x4ee   : > { %3468 = vrcp.f32 %v1005_v49 }
 0x4f1   : > { %v1002_v50 = vpop.xlane.xlu1 %1001 }
 0x4f2   : > { %3470 = vrcp.f32 %v1002_v50 }
 0x4f5   : > { %v1100_v55 = vpop.permute.xlu1 %1099 }
 0x4f8   : > { %v3469_v51 = vpop.eup %3468 }
 0x4f9   : > { %v1009_v54 = vmul.f32 %v3469_v51, %v3465_v41 }
 0x4fc   : > { %v3471_v52 = vpop.eup %3470 }
 0x4fd   : > { %v1008_v53 = vmul.f32 %v3471_v52, %v3467_v45 }
 0x4ff   : > { %3128 = vmatprep.mubr.msk.f32.mxu1 %vm987_vm7, %v1008_v53 }
 0x500   : > { %3129 = vmatmul.mubr.msk.f32.vlgmr.msra.gmra.mrb[6].mxu1 %vm987_vm7, %v1009_v54 }
 0x501   : > { %3247 = vmatpush3.bf16.xpose.msk.msra.mxu1 %vm4136_vm2, %v3242_v40  ;;  %3135 = vmatprep.mubr.msk.f32.mxu1 %vm895_vm1, %v1098_v48 }
 0x508   : > { %3136 = vmatmul.mubr.msk.f32.vlgmr.msra.gmra.mrb[8].mxu1 %vm895_vm1, %v1100_v55 }
 0x5d3   : > { %v3130_v57 = vpop.f32.mrb[6].mxu1 }
 0x5d4   : > { %v1082_v58 = vpop.f32.mrb[7].mxu1 }
 0x5d5   : > { %v1091_v60 = vpack.c.bf16 %v3130_v57, %v1082_v58 }
 0x5d7   : > { %3158 = vmatmul.mubr.msk.bf16.vlgmr.msra.gmra.mrb[8].mxu0 %vm895_vm1, %v1091_v60 }
 0x5d8   : > { %3179 = vmatprep.mubr.msk.bf16.mxu0 %vm3766_vm0, %v3765_v27 }
 0x5db   : > { %v3137_v62 = vpop.f32.mrb[8].mxu1 }
 0x5dc   : > { %v1189_v63 = vmul.f32 0.17677669, %v3137_v62  ;;  %v1179_v0 = vpop.f32.mrb[9].mxu1 }
 0x5dd   : > { %v1188_v2 = vmul.f32 0.17677669, %v1179_v0 }
 0x5de   : > { %v1191_v3 = vadd.f32 %v1189_v63, %v4173_v17 }
 0x5df   : > { %v1190_v5 = vadd.f32 %v1188_v2, %v4171_v14 }
 0x5e0   : > { %v1195_v6 = vsel %vm987_vm7, %v1191_v3, -inf }
 0x5e1   : > { %1196 = vmax.xlane.f32.xlu0 %v1195_v6  ;;  %v1192_v9 = vsel %vm987_vm7, %v1190_v5, -inf }
 0x5e2   : > { %1193 = vmax.xlane.f32.xlu1 %v1192_v9 }
 0x5f3   : > { %3368 = vrot.lane.b32.xlu1 %v4209_v10, %s3767_s4 }
 0x5f7   : > { %1420 = vrot.lane.b32.xlu1 %v4132_v59, %s3769_s17 }
 0x5fb   : > { %1422 = vrot.lane.b32.xlu1 %v4154_v4, %s3769_s17 }
 0x66e   : > { %v1197_v11 = vpop.xlane.xlu0 %1196 }
 0x66f   : > { %v1199_v12 = vsub.f32 %v1191_v3, %v1197_v11  ;;  %v1194_v13 = vpop.xlane.xlu1 %1193 }
 0x670   : > { %v1198_v15 = vsub.f32 %v1190_v5, %v1194_v13 }
 0x671   : > { %v1202_v16 = vmul.f32 1.442695, %v1199_v12 }
 0x672   : > { %v1200_v18 = vmul.f32 1.442695, %v1198_v15 }
 0x673   : > { %v3369_v19 = vpop.permute.xlu1 %3368 }
 0x674   : > { %3472 = vpow2.f32 %v1200_v18  ;;  %v3371_v20 = vunpack.i.h.bf16 %v3369_v19  ;;  %v3370_v21 = vunpack.i.l.bf16 %v3369_v19 }
 0x675   : > { %3474 = vpow2.f32 %v1202_v16 }
 0x676   : > { %v3248_v22 = vpack.c.bf16 %v3371_v20, %v3370_v21 }
 0x677   : > { %v1421_v49 = vpop.permute.xlu1 %1420 }
 0x678   : > { %3249 = vmatprep.subr.bf16.mxu1 %v3248_v22 }
 0x679   : > { %3251 = vmatpush3.bf16.msra.mxu1 %v3248_v22  ;;  %v3420_v22 = vld [vmem:[%s4048_s30 + $0xe0] sm:$0xff]  }
 0x67a   : > { %3145 = vmatprep.subr.bf16.mxu1 %v3765_v27  ;;  %3176 = vmatpush3.bf16.msra.mxu0 %v3420_v22  ;;  %v2892_v22 = vld [vmem:[%s4067_s23 + $0x3] ss:$0 sm:$0xff] }
 0x67b   : > { %v1423_v50 = vpop.permute.xlu1 %1422  ;;  %3177 = vmatprep.subr.bf16.mxu0 %v3765_v27 }
 0x67e   : > { %v3473_v23 = vpop.eup %3472 }
 0x67f   : > { %v1204_v24 = vsel %vm987_vm7, %v3473_v23, 0.0  ;;  %v3475_v25 = vpop.eup %3474 }
 0x680   : > { %1205 = vadd.xlane.f32.xlu0 %v1204_v24  ;;  %v1207_v26 = vsel %vm987_vm7, %v3475_v25, 0.0 }
 0x684   : > { %1208 = vadd.xlane.f32.xlu0 %v1207_v26 }
 0x69a   : > { %3373 = vrot.lane.b32.xlu0 %v4144_v1, %s3769_s17 }
 0x6aa   : > { %v1413_v28 = vpop.f32.mrb[8].mxu0 }
 0x6ab   : > { %v3159_v29 = vpop.f32.mrb[9].mxu0 }
 0x6ac   : > { %v1416_v30 = vpop.f32.mrb[10].mxu0 }
 0x6ad   : > { %v3160_v31 = vpop.f32.mrb[11].mxu0 }
 0x70d   : > { %v1206_v32 = vpop.xlane.xlu0 %1205 }
 0x70e   : > { %3476 = vrcp.f32 %v1206_v32 }
 0x711   : > { %v1209_v33 = vpop.xlane.xlu0 %1208 }
 0x712   : > { %3478 = vrcp.f32 %v1209_v33 }
 0x715   : > { %v3374_v37 = vpop.permute.xlu0 %3373 }
 0x716   : > { %v3376_v40 = vunpack.i.h.bf16 %v3374_v37  ;;  %v3375_v41 = vunpack.i.l.bf16 %v3374_v37 }
 0x718   : > { %v3477_v34 = vpop.eup %3476  ;;  %v3252_v45 = vpack.c.bf16 %v3376_v40, %v3375_v41 }
 0x719   : > { %v1212_v35 = vmul.f32 %v3477_v34, %v3473_v23 }
 0x71b   : > { %3142 = vmatprep.mubr.msk.f32.mxu1 %vm987_vm7, %v1212_v35  ;;  %v3421_v35 = vld [vmem:[%s4048_s30 + $0xe8] sm:$0xff]  }
 0x71c   : > { %v3479_v36 = vpop.eup %3478  ;;  %3178 = vmatpush3.bf16.msra.mxu0 %v3421_v35 }
 0x71d   : > { %v1213_v39 = vmul.f32 %v3479_v36, %v3475_v25 }
 0x71f   : > { %3143 = vmatmul.mubr.msk.f32.vlgmr.msra.gmra.mrb[10].mxu1 %vm987_vm7, %v1213_v39 }
 0x720   : > { %3146 = vmatpush3.bf16.msra.mxu1 %v3418_v38  ;;  %3149 = vmatprep.mubr.msk.bf16.mxu1 %vm3766_vm0, %v3765_v27 }
 0x721   : > { %3147 = vmatprep.subr.bf16.mxu1 %v3765_v27 }
 0x724   : > { %3148 = vmatpush3.bf16.msra.mxu1 %v3419_v44 }
 0x725   : > { %3254 = vmatprep.subr.msk.bf16.mxu1 %vm4136_vm2, %v3252_v45 }
 0x7f2   : > { %v3144_v46 = vpop.f32.mrb[10].mxu1 }
 0x7f3   : > { %v1294_v47 = vpop.f32.mrb[11].mxu1 }
 0x7f4   : > { %v1303_v48 = vpack.c.bf16 %v3144_v46, %v1294_v47 }
 0x7f6   : > { %3150 = vmatmul.mubr.msk.bf16.vlgmr.msra.gmra.mrb[12].mxu1 %vm895_vm1, %v1303_v48 }
 0x7f7   : > { %3257 = vmatpush3.bf16.xpose.msk.msra.mxu1 %vm4136_vm2, %v3252_v45  ;;  %3165 = vmatprep.mubr.msk.f32.mxu1 %vm895_vm1, %v1421_v49 }
 0x7fe   : > { %3166 = vmatmul.mubr.msk.f32.vlgmr.msra.gmra.mrb[16].mxu1 %vm895_vm1, %v1423_v50 }
 0x8c9   : > { %v1357_v51 = vpop.f32.mrb[12].mxu1 }
 0x8ca   : > { %v4236_v52 = vadd.f32 %v1413_v28, %v1357_v51  ;;  %v3151_v53 = vpop.f32.mrb[13].mxu1 }
 0x8cb   : > { %v1360_v54 = vpop.f32.mrb[14].mxu1 }
 0x8cc   : > { %v4238_v55 = vadd.f32 %v1416_v30, %v1360_v54  ;;  %v3152_v56 = vpop.f32.mrb[15].mxu1 }
 0x8d1   : > { %v3167_v57 = vpop.f32.mrb[16].mxu1 }
 0x8d2   : > { %v1512_v58 = vmul.f32 0.17677669, %v3167_v57  ;;  %v1502_v60 = vpop.f32.mrb[17].mxu1 }
 0x8d3   : > { %v1511_v62 = vmul.f32 0.17677669, %v1502_v60 }
 0x8d4   : > { %v1514_v63 = vadd.f32 %v1512_v58, %v4173_v17 }
 0x8d5   : > { %v1513_v0 = vadd.f32 %v1511_v62, %v4171_v14 }
 0x8d6   : > { %v1518_v2 = vsel %vm987_vm7, %v1514_v63, -inf }
 0x8d7   : > { %1519 = vmax.xlane.f32.xlu0 %v1518_v2  ;;  %v1515_v3 = vsel %vm987_vm7, %v1513_v0, -inf }
 0x8d8   : > { %1516 = vmax.xlane.f32.xlu1 %v1515_v3 }
 0x8e9   : > { %3378 = vrot.lane.b32.xlu1 %v4209_v10, %s3769_s17 }
 0x8ed   : > { %1687 = vrot.lane.b32.xlu1 %v4132_v59, %s3770_s19 }
 0x8f1   : > { %1689 = vrot.lane.b32.xlu1 %v4154_v4, %s3770_s19 }
 0x964   : > { %v1520_v5 = vpop.xlane.xlu0 %1519 }
 0x965   : > { %v1522_v6 = vsub.f32 %v1514_v63, %v1520_v5  ;;  %v1517_v9 = vpop.xlane.xlu1 %1516  ;;  %v3422_v63 = vld [vmem:[%s4048_s30 + $0xf0] sm:$0xff]  }
 0x966   : > { %v1521_v11 = vsub.f32 %v1513_v0, %v1517_v9 }
 0x967   : > { %v1525_v12 = vmul.f32 1.442695, %v1522_v6 }
 0x968   : > { %v1523_v13 = vmul.f32 1.442695, %v1521_v11 }
 0x969   : > { %3480 = vpow2.f32 %v1525_v12  ;;  %v3379_v15 = vpop.permute.xlu1 %3378 }
 0x96a   : > { %v3381_v16 = vunpack.i.h.bf16 %v3379_v15  ;;  %v3380_v18 = vunpack.i.l.bf16 %v3379_v15  ;;  %3482 = vpow2.f32 %v1523_v13 }
 0x96c   : > { %v3258_v19 = vpack.c.bf16 %v3381_v16, %v3380_v18  ;;  %v3423_v18 = vld [vmem:[%s4048_s30 + $0xf8] sm:$0xff]  }
 0x96d   : > { %v1688_v33 = vpop.permute.xlu1 %1687 }
 0x96e   : > { %3259 = vmatprep.subr.bf16.mxu1 %v3258_v19 }
 0x96f   : > { %3261 = vmatpush3.bf16.msra.mxu1 %v3258_v19 }
 0x971   : > { %v1690_v34 = vpop.permute.xlu1 %1689 }
 0x973   : > { %v3481_v20 = vpop.eup %3480 }
 0x974   : > { %v1530_v59 = vsel %vm987_vm7, %v3481_v20, 0.0  ;;  %v3483_v21 = vpop.eup %3482 }
 0x975   : > { %1531 = vadd.xlane.f32.xlu0 %v1530_v59  ;;  %v1527_v4 = vsel %vm987_vm7, %v3483_v21, 0.0 }
 0x979   : > { %1528 = vadd.xlane.f32.xlu0 %v1527_v4 }
 0x98f   : > { %3383 = vrot.lane.b32.xlu0 %v4144_v1, %s3770_s19 }
 0xa02   : > { %v1532_v23 = vpop.xlane.xlu0 %1531 }
 0xa03   : > { %3484 = vrcp.f32 %v1532_v23 }
 0xa06   : > { %v1529_v24 = vpop.xlane.xlu0 %1528 }
 0xa07   : > { %3486 = vrcp.f32 %v1529_v24 }
 0xa0a   : > { %v3384_v25 = vpop.permute.xlu0 %3383 }
 0xa0b   : > { %v3386_v26 = vunpack.i.h.bf16 %v3384_v25  ;;  %v3385_v28 = vunpack.i.l.bf16 %v3384_v25 }
 0xa0d   : > { %v3262_v29 = vpack.c.bf16 %v3386_v26, %v3385_v28  ;;  %v3485_v30 = vpop.eup %3484 }
 0xa0e   : > { %v1536_v1 = vmul.f32 %v3485_v30, %v3481_v20  ;;  %v3424_v30 = vld [vmem:[%s4054_s29] ss:$8 sps:$4 sm:$0xff]  }
 0xa0f   : > { %3264 = vmatprep.subr.msk.bf16.mxu1 %vm4136_vm2, %v3262_v29 }
 0xa11   : > { %v3487_v31 = vpop.eup %3486 }
 0xa12   : > { %v1535_v32 = vmul.f32 %v3487_v31, %v3483_v21  ;;  %v3426_v31 = vld [vmem:[%s4054_s29 + $0x4] ss:$8 sps:$4 sm:$0xff]  }
 0xa14   : > { %3172 = vmatprep.mubr.msk.f32.mxu1 %vm987_vm7, %v1535_v32  ;;  %v3429_v32 = vld [vmem:[%s4054_s29 + $0x14] ss:$8 sps:$4 sm:$0xff]  }
 0xa15   : > { %3173 = vmatmul.mubr.msk.f32.vlgmr.msra.gmra.mrb[18].mxu1 %vm987_vm7, %v1536_v1  ;;  %v3427_v1 = vld [vmem:[%s4054_s29 + $0x10] ss:$8 sps:$4 sm:$0xff]  }
 0xa16   : > { %3267 = vmatpush3.bf16.xpose.msk.msra.mxu1 %vm4136_vm2, %v3262_v29  ;;  %3187 = vmatprep.mubr.msk.f32.mxu1 %vm895_vm1, %v1688_v33 }
 0xa17   : > { %3197 = vmatprep.subr.bf16.mxu1 %v3765_v27 }
 0xa1d   : > { %3188 = vmatmul.mubr.msk.f32.vlgmr.msra.gmra.mrb[20].mxu1 %vm895_vm1, %v1690_v34 }
 0xa1e   : > { %3201 = vmatprep.mubr.msk.bf16.mxu1 %vm3766_vm0, %v3765_v27  ;;  %3198 = vmatpush3.bf16.msra.mxu1 %v3422_v63 }
 0xa1f   : > { %3199 = vmatprep.subr.bf16.mxu1 %v3765_v27 }
 0xa22   : > { %3200 = vmatpush3.bf16.msra.mxu1 %v3423_v18  ;;  %v3453_v18 = vld [vmem:[%s4056_s20 + $0x10] sm:$0xff]  }
 0xae8   : > { %v3174_v36 = vpop.f32.mrb[18].mxu1 }
 0xae9   : > { %v1615_v37 = vpop.f32.mrb[19].mxu1 }
 0xaea   : > { %v1624_v38 = vpack.c.bf16 %v3174_v36, %v1615_v37 }
 0xaec   : > { %3180 = vmatmul.mubr.msk.bf16.vlgmr.msra.gmra.mrb[12].mxu0 %vm895_vm1, %v1624_v38 }
 0xaf0   : > { %v3189_v39 = vpop.f32.mrb[20].mxu1 }
 0xaf1   : > { %v1779_v61 = vmul.f32 0.17677669, %v3189_v39  ;;  %v1769_v40 = vpop.f32.mrb[21].mxu1  ;;  %v3432_v39 = vld [vmem:[%s4054_s29 + $0x24] ss:$8 sps:$4 sm:$0xff]  }
 0xaf2   : > { %v1778_v41 = vmul.f32 0.17677669, %v1769_v40  ;;  %v3435_v40 = vld [vmem:[%s4054_s29 + $0x34] ss:$8 sps:$4 sm:$0xff]  }
 0xaf3   : > { %v1781_v44 = vadd.f32 %v1779_v61, %v4173_v17  ;;  %v3430_v61 = vld [vmem:[%s4054_s29 + $0x20] ss:$8 sps:$4 sm:$0xff]  }
 0xaf4   : > { %v1780_v45 = vadd.f32 %v1778_v41, %v4171_v14  ;;  %v3433_v41 = vld [vmem:[%s4054_s29 + $0x30] ss:$8 sps:$4 sm:$0xff]  }
 0xaf5   : > { %v1785_v46 = vsel %vm987_vm7, %v1781_v44, -inf }
 0xaf6   : > { %1786 = vmax.xlane.f32.xlu0 %v1785_v46  ;;  %v1782_v47 = vsel %vm987_vm7, %v1780_v45, -inf  ;;  %v3441_v46 = vld [vmem:[%s4054_s29 + $0x54] ss:$8 sps:$4 sm:$0xff]  }
 0xaf7   : > { %1783 = vmax.xlane.f32.xlu1 %v1782_v47  ;;  %v3439_v47 = vld [vmem:[%s4054_s29 + $0x50] ss:$8 sps:$4 sm:$0xff]  }
 0xb08   : > { %3388 = vrot.lane.b32.xlu1 %v4209_v10, %s3770_s19 }
 0xb83   : > { %v1787_v48 = vpop.xlane.xlu0 %1786 }
 0xb84   : > { %v1789_v49 = vsub.f32 %v1781_v44, %v1787_v48  ;;  %v1784_v50 = vpop.xlane.xlu1 %1783  ;;  %v3438_v44 = vld [vmem:[%s4054_s29 + $0x44] ss:$8 sps:$4 sm:$0xff]  }
 0xb85   : > { %v1788_v51 = vsub.f32 %v1780_v45, %v1784_v50  ;;  %v3436_v45 = vld [vmem:[%s4054_s29 + $0x40] ss:$8 sps:$4 sm:$0xff]   ;;  %v3444_v48 = vld [vmem:[%s4054_s29 + $0x64] ss:$8 sps:$4 sm:$0xff]   ;;  %v3447_v50 = vld [vmem:[%s4054_s29 + $0x74] ss:$8 sps:$4 sm:$0xff]  }
 0xb86   : > { %v1792_v53 = vmul.f32 1.442695, %v1789_v49  ;;  %v3442_v49 = vld [vmem:[%s4054_s29 + $0x60] ss:$8 sps:$4 sm:$0xff]  }
 0xb87   : > { %v1790_v54 = vmul.f32 1.442695, %v1788_v51  ;;  %v3445_v51 = vld [vmem:[%s4054_s29 + $0x70] ss:$8 sps:$4 sm:$0xff]  }
 0xb88   : > { %v3389_v56 = vpop.permute.xlu1 %3388 }
 0xb89   : > { %3488 = vpow2.f32 %v1790_v54  ;;  %v3391_v17 = vunpack.i.h.bf16 %v3389_v56  ;;  %v3390_v14 = vunpack.i.l.bf16 %v3389_v56 }
 0xb8a   : > { %3490 = vpow2.f32 %v1792_v53  ;;  %v3771_v53 = vmov 0  }
 0xb8b   : > { %v3268_v57 = vpack.c.bf16 %v3391_v17, %v3390_v14 }
 0xb8d   : > { %3269 = vmatprep.subr.bf16.mxu0 %v3268_v57 }
 0xb8e   : > { %3271 = vmatpush3.bf16.msra.mxu0 %v3268_v57 }
 0xb8f   : > { %2109 = vmatprep.subr.bf16.mxu0 %v3426_v31 }
 0xb93   : > { %v3489_v58 = vpop.eup %3488 }
 0xb94   : > { %v1794_v60 = vsel %vm987_vm7, %v3489_v58, 0.0  ;;  %v3491_v62 = vpop.eup %3490 }
 0xb95   : > { %1795 = vadd.xlane.f32.xlu0 %v1794_v60  ;;  %v1797_v10 = vsel %vm987_vm7, %v3491_v62, 0.0 }
 0xb99   : > { %1798 = vadd.xlane.f32.xlu0 %v1797_v10  ;;  %v2893_v10 = vld [vmem:[%s4067_s23 + $0x4] ss:$0 sm:$0xff] }
 0xbbf   : > { %v1678_v0 = vpop.f32.mrb[12].mxu0 }
 0xbc0   : > { %v1685_v2 = vadd.f32 %v1678_v0, %v4236_v52  ;;  %v3181_v3 = vpop.f32.mrb[13].mxu0 }
 0xbc1   : > { %v1681_v5 = vpop.f32.mrb[14].mxu0  ;;  %v2894_v3 = vld [vmem:[%s4067_s23 + $0x5] ss:$0 sm:$0xff] }
 0xbc2   : > { %v1686_v6 = vadd.f32 %v1681_v5, %v4238_v55  ;;  %v3182_v9 = vpop.f32.mrb[15].mxu0 }
 0xc22   : > { %v1796_v11 = vpop.xlane.xlu0 %1795 }
 0xc23   : > { %3492 = vrcp.f32 %v1796_v11 }
 0xc26   : > { %v1799_v12 = vpop.xlane.xlu0 %1798 }
 0xc27   : > { %3494 = vrcp.f32 %v1799_v12  ;;  %v3448_v12 = vld [vmem:[%s4056_s20 + $0x40] sm:$0xff]  }
 0xc28   : > { %3023 = vmatprep.subr.bf16.mxu1 %v3448_v12 }
 0xc2d   : > { %v3493_v13 = vpop.eup %3492 }
 0xc2e   : > { %v1802_v15 = vmul.f32 %v3493_v13, %v3489_v58  ;;  %v3449_v13 = vld [vmem:[%s4056_s20] sm:$0xff]  }
 0xc30   : > { %3194 = vmatprep.mubr.msk.f32.mxu0 %vm987_vm7, %v1802_v15  ;;  %v3450_v15 = vld [vmem:[%s4056_s20 + $0x48] sm:$0xff]  }
 0xc31   : > { %v3495_v16 = vpop.eup %3494 }
 0xc32   : > { %v1803_v27 = vmul.f32 %v3495_v16, %v3491_v62  ;;  %v3451_v16 = vld [vmem:[%s4056_s20 + $0x8] sm:$0xff]  }
 0xc34   : > { %3195 = vmatmul.mubr.msk.f32.vlgmr.msra.gmra.mrb[16].mxu0 %vm987_vm7, %v1803_v27  ;;  %v3452_v27 = vld [vmem:[%s4056_s20 + $0x50] sm:$0xff]  }
 0xc35   : > { %2110 = vmatpush1.bf16.msra.mxu0 %v3424_v30  ;;  %2141 = vmatprep.mubr.bf16.mxu0 %v3771_v53 }
 0xc36   : > { %2111 = vmatprep.subr.bf16.mxu0 %v3429_v32 }
 0xc39   : > { %2112 = vmatpush1.bf16.msra.mxu0 %v3427_v1 }
 0xc3a   : > { %2113 = vmatprep.subr.bf16.mxu0 %v3432_v39 }
 0xc3d   : > { %2114 = vmatpush1.bf16.msra.mxu0 %v3430_v61 }
 0xc3e   : > { %2115 = vmatprep.subr.bf16.mxu0 %v3435_v40 }
 0xc41   : > { %2116 = vmatpush1.bf16.msra.mxu0 %v3433_v41 }
 0xc42   : > { %2117 = vmatprep.subr.bf16.mxu0 %v3438_v44 }
 0xc45   : > { %2118 = vmatpush1.bf16.msra.mxu0 %v3436_v45 }
 0xc46   : > { %2119 = vmatprep.subr.bf16.mxu0 %v3441_v46 }
 0xc49   : > { %2120 = vmatpush1.bf16.msra.mxu0 %v3439_v47 }
 0xc4a   : > { %2121 = vmatprep.subr.bf16.mxu0 %v3444_v48 }
 0xc4d   : > { %2122 = vmatpush1.bf16.msra.mxu0 %v3442_v49 }
 0xc4e   : > { %2123 = vmatprep.subr.bf16.mxu0 %v3447_v50 }
 0xc51   : > { %2124 = vmatpush1.bf16.msra.mxu0 %v3445_v51 }
 0xd07   : > { %v3196_v52 = vpop.f32.mrb[16].mxu0 }
 0xd08   : > { %v1882_v19 = vpop.f32.mrb[17].mxu0 }
 0xd09   : > { %v1891_v55 = vpack.c.bf16 %v3196_v52, %v1882_v19  ;;  %v3454_v52 = vld [vmem:[%s4056_s20 + $0x58] sm:$0xff]  }
 0xd0a   : > { %v3455_v19 = vld [vmem:[%s4056_s20 + $0x18] sm:$0xff]  }
 0xd0b   : > { %3202 = vmatmul.mubr.msk.bf16.vlgmr.msra.gmra.mrb[24].mxu1 %vm895_vm1, %v1891_v55  ;;  %v3456_v55 = vld [vmem:[%s4056_s20 + $0x60] sm:$0xff]  }
 0xd0c   : > { %3024 = vmatpush3.bf16.msra.mxu1 %v3449_v13 }
 0xd0d   : > { %3025 = vmatprep.subr.bf16.mxu1 %v3450_v15 }
 0xd10   : > { %3026 = vmatpush3.bf16.msra.mxu1 %v3451_v16 }
 0xd11   : > { %3027 = vmatprep.subr.bf16.mxu1 %v3452_v27 }
 0xd14   : > { %3028 = vmatpush3.bf16.msra.mxu1 %v3453_v18 }
 0xd15   : > { %3029 = vmatprep.subr.bf16.mxu1 %v3454_v52 }
 0xd18   : > { %3030 = vmatpush3.bf16.msra.mxu1 %v3455_v19 }
 0xd19   : > { %3031 = vmatprep.subr.bf16.mxu1 %v3456_v55  ;;  %v2911_v55 = vld [vmem:[%s4067_s23 + $0x6] ss:$0 sm:$0xff] }
 0xdde   : > { %v1945_v20 = vpop.f32.mrb[24].mxu1 }
 0xddf   : > { %v1952_v59 = vadd.f32 %v1945_v20, %v1685_v2  ;;  %v3203_v21 = vpop.f32.mrb[25].mxu1  ;;  %v3457_v20 = vld [vmem:[%s4056_s20 + $0x20] sm:$0xff]  }
 0xde0   : > { %v1948_v4 = vpop.f32.mrb[26].mxu1  ;;  %3032 = vmatpush3.bf16.msra.mxu1 %v3457_v20  ;;  %v3459_v21 = vld [vmem:[%s4056_s20 + $0x28] sm:$0xff]  }
 0xde1   : > { %v1954_v23 = vadd.f32 %v1952_v59, %v4110_v42  ;;  %v1953_v24 = vadd.f32 %v1948_v4, %v1686_v6  ;;  %v3204_v25 = vpop.f32.mrb[27].mxu1  ;;  %v3458_v59 = vld [vmem:[%s4056_s20 + $0x68] sm:$0xff]   ;;  %v3460_v4 = vld [vmem:[%s4056_s20 + $0x70] sm:$0xff]  }
 0xde2   : > { %3033 = vmatprep.subr.bf16.mxu1 %v3458_v59  ;;  %v4329_v25 = vshrl.u32 %v526_v7, 7 }
 0xde3   : > { %v1955_v26 = vadd.f32 %v1953_v24, %v4112_v43  ;;  %v1961_v28 = vadd.f32 %v2892_v22, %v1954_v23  ;;  %v3462_v23 = vld [vmem:[%s4056_s20 + $0x78] sm:$0xff]  }
 0xde4   : > { %3034 = vmatpush3.bf16.msra.mxu1 %v3459_v21  ;;  %v3463_v24 = vld [vmem:[%s4056_s20 + $0x38] sm:$0xff]  }
 0xde5   : > { %1965 = vadd.xlane.f32.xlu0 %v1961_v28  ;;  %v1962_v29 = vadd.f32 %v2892_v22, %v1955_v26  ;;  %v3461_v22 = vld [vmem:[%s4056_s20 + $0x30] sm:$0xff]   ;;  %3035 = vmatprep.subr.bf16.mxu1 %v3460_v4  ;;  %v2021_v26 = vsub.s32 0, %v4329_v25 }
 0xde8   : > { %3036 = vmatpush3.bf16.msra.mxu1 %v3461_v22 }
 0xde9   : > { %1967 = vadd.xlane.f32.xlu0 %v1962_v29  ;;  %3037 = vmatprep.subr.bf16.mxu1 %v3462_v23 }
 0xdec   : > { %3038 = vmatpush3.bf16.msra.mxu1 %v3463_v24 }
 0xe72   : > { %v1966_v42 = vpop.xlane.xlu0 %1965 }
 0xe73   : > { %v1970_v33 = vmul.f32 0.0078125, %v1966_v42 }
 0xe75   : > { %v1972_v34 = vsub.f32 %v1961_v28, %v1970_v33  ;;  %v2017_v28 = vld [vmem:[%s4041_s22] sm:$0x3] }
 0xe76   : > { %v1968_v43 = vpop.xlane.xlu0 %1967  ;;  %v2022_v30 = vrot.slane %v2017_v28, %v2021_v26 }
 0xe77   : > { %v1971_v35 = vmul.f32 0.0078125, %v1968_v43  ;;  %v1974_v36 = vmul.f32 %v1972_v34, %v1972_v34 }
 0xe79   : > { %v1973_v37 = vsub.f32 %v1962_v29, %v1971_v35  ;;  %1976 = vadd.xlane.f32.xlu0 %v1974_v36  ;;  %v2025_v29 = vsub.s32 1, %v4329_v25 }
 0xe7b   : > { %v1975_v38 = vmul.f32 %v1973_v37, %v1973_v37  ;;  %v2026_v31 = vrot.slane %v2017_v28, %v2025_v29 }
 0xe7d   : > { %1978 = vadd.xlane.f32.xlu0 %v1975_v38 }
 0xf06   : > { %v1977_v54 = vpop.xlane.xlu0 %1976 }
 0xf07   : > { %v1980_v56 = vmul.f32 0.0078125, %v1977_v54 }
 0xf09   : > { %v1982_v17 = vadd.f32 1e-12, %v1980_v56 }
 0xf0a   : > { %v1979_v14 = vpop.xlane.xlu0 %1978 }
 0xf0b   : > { %3496 = vrsqrt.f32 %v1982_v17  ;;  %v1981_v57 = vmul.f32 0.0078125, %v1979_v14 }
 0xf0d   : > { %v1983_v58 = vadd.f32 1e-12, %v1981_v57 }
 0xf0f   : > { %3498 = vrsqrt.f32 %v1983_v58 }
 0xf15   : > { %v3497_v60 = vpop.eup %3496 }
 0xf16   : > { %v1986_v62 = vmul.f32 %v3497_v60, %v1972_v34 }
 0xf18   : > { %v1992_v2 = vmul.f32 %v2893_v10, %v1986_v62 }
 0xf19   : > { %v3499_v63 = vpop.eup %3498 }
 0xf1a   : > { %v1987_v0 = vmul.f32 %v3499_v63, %v1973_v37  ;;  %v4306_v6 = vadd.f32 %v2894_v3, %v1992_v2 }
 0xf1c   : > { %v1993_v5 = vmul.f32 %v2893_v10, %v1987_v0 }
 0xf1e   : > { %v4308_v9 = vadd.f32 %v2894_v3, %v1993_v5 }
 0xf20   : > { %v2000_v11 = vpack.c.bf16 %v4308_v9, %v4306_v6 }
 0xf22   : > { %2142 = vmatmul.mubr.bf16.vlgmr.msra.gmra.mrb[20].mxu0 %v2000_v11 }
 0xff5   : > { %v2143_v32 = vpop.f32.mrb[20].mxu0 }
 0xff6   : > { %v2144_v1 = vadd.f32 %v2143_v32, %v2022_v30  ;;  %v2145_v42 = vpop.f32.mrb[21].mxu0 }
 0xff7   : > { %v2146_v33 = vadd.f32 %v2145_v42, %v2026_v31  ;;  %v2147_v34 = vpop.f32.mrb[22].mxu0 }
 0xff8   : > { %v2156_v43 = vmul.f32 0.044715, %v2144_v1  ;;  %v2148_v35 = vadd.f32 %v2147_v34, %v2022_v30  ;;  %v2149_v36 = vpop.f32.mrb[23].mxu0  ;;  %v2152_v0 = vmul.f32 0.5, %v2144_v1 }
 0xff9   : > { %v2157_v37 = vmul.f32 0.044715, %v2146_v33  ;;  %v2150_v38 = vadd.f32 %v2149_v36, %v2026_v31  ;;  %v2153_v5 = vmul.f32 0.5, %v2146_v33 }
 0xffa   : > { %v2160_v39 = vmul.f32 %v2156_v43, %v2144_v1  ;;  %v2158_v7 = vmul.f32 0.044715, %v2148_v35  ;;  %v2154_v2 = vmul.f32 0.5, %v2148_v35 }
 0xffb   : > { %v2161_v61 = vmul.f32 %v2157_v37, %v2146_v33  ;;  %v2159_v40 = vmul.f32 0.044715, %v2150_v38  ;;  %v2155_v11 = vmul.f32 0.5, %v2150_v38 }
 0xffc   : > { %v2164_v41 = vmul.f32 %v2160_v39, %v2144_v1  ;;  %v2162_v44 = vmul.f32 %v2158_v7, %v2148_v35  ;;  %v2928_v39 = vld [vmem:[%s4067_s23 + $0x7] ss:$0 sm:$0xff] }
 0xffd   : > { %v2165_v45 = vmul.f32 %v2161_v61, %v2146_v33  ;;  %v2163_v46 = vmul.f32 %v2159_v40, %v2150_v38  ;;  %v2929_v61 = vld [vmem:[%s4067_s23 + $0x8] ss:$0 sm:$0xff] }
 0xffe   : > { %v2168_v47 = vadd.f32 %v2164_v41, %v2144_v1  ;;  %v2166_v48 = vmul.f32 %v2162_v44, %v2148_v35 }
 0xfff   : > { %v2167_v49 = vmul.f32 %v2163_v46, %v2150_v38  ;;  %v2169_v50 = vadd.f32 %v2165_v45, %v2146_v33 }
0x1000   : > { %v2172_v51 = vmul.f32 0.7978846, %v2168_v47  ;;  %v2170_v53 = vadd.f32 %v2166_v48, %v2148_v35 }
0x1001   : > { %v2171_v54 = vadd.f32 %v2167_v49, %v2150_v38  ;;  %v2173_v56 = vmul.f32 0.7978846, %v2169_v50  ;;  %v3512_v49 = vld [vmem:[%s4435_s7] sm:$0xff] (!%p2930_p6)   ;;  %v3772_v50 = vmov (!%p2930_p6), 0.0|0.0  }
0x1002   : > { %3500 = vtanh.f32 %v2172_v51  ;;  %v2174_v17 = vmul.f32 0.7978846, %v2170_v53  ;;  %3272 = vmatprep.subr.bf16.mxu0 (!%p2930_p6), %v3772_v50  ;;  %v3774_v51 = vmov (!%p2930_p6), 0.0   ;;  %v2408_v53 = vmul.u32 (!%p2930_p6), 8, %v4329_v25  ;;  %v3516_v25 = vld [vmem:[%s4435_s7 + $0x20] sm:$0xff] (!%p2930_p6)  }
0x1003   : > { %v2175_v14 = vmul.f32 0.7978846, %v2171_v54  ;;  %3502 = vtanh.f32 %v2173_v56  ;;  %3209 = vmatprep.mubr.msk.f32.mxu0 (!%p2930_p6), %vm3773_vm8, %v3774_v51  ;;  %3212 = vmatprep.subr.bf16.mxu1 (!%p2930_p6), %v3774_v51  ;;  %v3513_v54 = vld [vmem:[%s4435_s7 + $0x8] sm:$0xff] (!%p2930_p6)  }
0x1004   : > { %3504 = vtanh.f32 %v2174_v17  ;;  %vm2409_vm9 = vcmp.eq.s32.totalorder (!%p2930_p6), %v4166_v8, %v2408_v53  ;;  %v3514_v17 = vld [vmem:[%s4435_s7 + $0x10] sm:$0xff] (!%p2930_p6)   ;;  %v3515_v8 = vld [vmem:[%s4435_s7 + $0x18] sm:$0xff] (!%p2930_p6)  }
0x1005   : > { %3506 = vtanh.f32 %v2175_v14  ;;  %v2410_v56 = vsel (!%p2930_p6), %vm2409_vm9, 1.0, %v3774_v51  ;;  %v3517_v14 = vld [vmem:[%s4435_s7 + $0x28] sm:$0xff] (!%p2930_p6)  }
0x100c   : > { %v3501_v57 = vpop.eup %3500 }
0x100d   : > { %v3503_v58 = vpop.eup %3502  ;;  %v2180_v60 = vadd.f32 1.0, %v3501_v57  ;;  %v3518_v57 = vld [vmem:[%s4435_s7 + $0x30] sm:$0xff] (!%p2930_p6)  }
0x100e   : > { %v3505_v62 = vpop.eup %3504  ;;  %v2181_v10 = vadd.f32 1.0, %v3503_v58  ;;  %v3519_v58 = vld [vmem:[%s4435_s7 + $0x38] sm:$0xff] (!%p2930_p6)  }
0x100f   : > { %v3507_v63 = vpop.eup %3506  ;;  %v2182_v3 = vadd.f32 1.0, %v3505_v62  ;;  %v2184_v13 = vmul.f32 %v2180_v60, %v2152_v0 }
0x1010   : > { %v2183_v12 = vadd.f32 1.0, %v3507_v63  ;;  %v2185_v16 = vmul.f32 %v2181_v10, %v2153_v5  ;;  %v2932_v63 = vld [vmem:[%s4436_s8] ss:$0 sm:$0xff] (!%p2930_p6) }
0x1011   : > { %v2186_v15 = vmul.f32 %v2182_v3, %v2154_v2 }
0x1012   : > { %v2187_v27 = vmul.f32 %v2183_v12, %v2155_v11 }
0x1013   : > { %v2188_v18 = vpack.c.bf16 %v2186_v15, %v2184_v13 }
0x1014   : > { %v2189_v52 = vpack.c.bf16 %v2187_v27, %v2185_v16 }
0x1016   : > { %2355 = vmatprep.mubr.bf16.mxu1 %v2189_v52 }
0x1017   : > { %2356 = vmatmul.mubr.bf16.vlgmr.msra.gmra.mrb[28].mxu1 %v2188_v18 }
0x1018   : > { %3213 = vmatpush3.bf16.msra.mxu1 (!%p2930_p6), %v3512_v49  ;;  %3228 = vmatprep.mubr.msk.bf16.mxu1 (!%p2930_p6), %vm3773_vm8, %v3774_v51 }
0x1019   : > { %3214 = vmatprep.subr.bf16.mxu1 (!%p2930_p6), %v3774_v51 }
0x101c   : > { %3215 = vmatpush3.bf16.msra.mxu1 (!%p2930_p6), %v3513_v54 }
0x101d   : > { %3216 = vmatprep.subr.bf16.mxu1 (!%p2930_p6), %v3774_v51 }
0x1020   : > { %3217 = vmatpush3.bf16.msra.mxu1 (!%p2930_p6), %v3514_v17 }
0x1021   : > { %3218 = vmatprep.subr.bf16.mxu1 (!%p2930_p6), %v3774_v51 }
0x1024   : > { %3219 = vmatpush3.bf16.msra.mxu1 (!%p2930_p6), %v3515_v8 }
0x1025   : > { %3220 = vmatprep.subr.bf16.mxu1 (!%p2930_p6), %v3774_v51 }
0x1028   : > { %3221 = vmatpush3.bf16.msra.mxu1 (!%p2930_p6), %v3516_v25 }
0x1029   : > { %3222 = vmatprep.subr.bf16.mxu1 (!%p2930_p6), %v3774_v51 }
0x102c   : > { %3223 = vmatpush3.bf16.msra.mxu1 (!%p2930_p6), %v3517_v14 }
0x102d   : > { %3224 = vmatprep.subr.bf16.mxu1 (!%p2930_p6), %v3774_v51 }
0x1030   : > { %3225 = vmatpush3.bf16.msra.mxu1 (!%p2930_p6), %v3518_v57 }
0x1031   : > { %3226 = vmatprep.subr.bf16.mxu1 (!%p2930_p6), %v3774_v51 }
0x1034   : > { %3227 = vmatpush3.bf16.msra.mxu1 (!%p2930_p6), %v3519_v58 }
0x10ea   : > { %v3039_v19 = vpop.f32.mrb[28].mxu1 }
0x10eb   : > { %v3040_v20 = vpop.f32.mrb[29].mxu1 }
0x10ec   : > { %v3041_v59 = vadd.f32 %v3040_v20, %v3039_v19  ;;  %v3042_v21 = vpop.f32.mrb[30].mxu1 }
0x10ed   : > { %v3043_v4 = vpop.f32.mrb[31].mxu1 }
0x10ee   : > { %v2358_v22 = vadd.f32 %v3041_v59, %v2911_v55  ;;  %v3044_v23 = vadd.f32 %v3043_v4, %v3042_v21 }
0x10f0   : > { %v2361_v24 = vadd.f32 %v3044_v23, %v2911_v55  ;;  %v2364_v26 = vadd.f32 %v2358_v22, %v4306_v6 }
0x10f2   : > { %2368 = vadd.xlane.f32.xlu1 %v2364_v26  ;;  %v2365_v28 = vadd.f32 %v2361_v24, %v4308_v9 }
0x10f4   : > { %2370 = vadd.xlane.f32.xlu0 %v2365_v28 }
0x117f   : > { %v2369_v29 = vpop.xlane.xlu1 %2368 }
0x1180   : > { %v2372_v30 = vmul.f32 0.0078125, %v2369_v29 }
0x1181   : > { %v2371_v31 = vpop.xlane.xlu0 %2370 }
0x1182   : > { %v2374_v32 = vsub.f32 %v2364_v26, %v2372_v30  ;;  %v2373_v1 = vmul.f32 0.0078125, %v2371_v31 }
0x1184   : > { %v2375_v42 = vsub.f32 %v2365_v28, %v2373_v1  ;;  %v2376_v33 = vmul.f32 %v2374_v32, %v2374_v32 }
0x1186   : > { %2378 = vadd.xlane.f32.xlu0 %v2376_v33  ;;  %v2377_v34 = vmul.f32 %v2375_v42, %v2375_v42 }
0x118a   : > { %2380 = vadd.xlane.f32.xlu0 %v2377_v34 }
0x1213   : > { %v2379_v43 = vpop.xlane.xlu0 %2378 }
0x1214   : > { %v2382_v35 = vmul.f32 0.0078125, %v2379_v43 }
0x1216   : > { %v2384_v36 = vadd.f32 1e-12, %v2382_v35 }
0x1217   : > { %v2381_v6 = vpop.xlane.xlu0 %2380 }
0x1218   : > { %3508 = vrsqrt.f32 %v2384_v36  ;;  %v2383_v37 = vmul.f32 0.0078125, %v2381_v6 }
0x121a   : > { %v2385_v9 = vadd.f32 1e-12, %v2383_v37 }
0x121c   : > { %3510 = vrsqrt.f32 %v2385_v9 }
0x1222   : > { %v3509_v38 = vpop.eup %3508 }
0x1223   : > { %v2388_v7 = vmul.f32 %v3509_v38, %v2374_v32 }
0x1225   : > { %v2394_v40 = vmul.f32 %v2928_v39, %v2388_v7 }
0x1226   : > { %v3511_v41 = vpop.eup %3510 }
0x1227   : > { %v2400_v44 = vadd.f32 %v2929_v61, %v2394_v40  ;;  %v2389_v45 = vmul.f32 %v3511_v41, %v2375_v42  ;;  %2407 = sbr.rel (%p2930_p6) target bundleno = 5087 (0x13df), region = 76 }
0x1229   : > { %2402 = vst [vmem:[#allocation2] sm:$0xff] %v2400_v44  ;;  %v2395_v46 = vmul.f32 %v2928_v39, %v2389_v45 }
0x122b   : > { %v2401_v47 = vadd.f32 %v2929_v61, %v2395_v46 }
0x122d   : > { %2403 = vst [vmem:[#allocation2 + $0x8] sm:$0xff] %v2401_v47  ;;  %v3273_v48 = vpack.c.bf16 (!%p2930_p6), %v2401_v47, %v2400_v44 }
0x122f   : > { %3274 = vmatpush3.bf16.msra.mxu0 %v3273_v48 }
0x1232   : > { %3210 = vmatmul.mubr.msk.f32.vlgmr.msra.gmra.mrb[0].mxu0 %vm987_vm7, %v2410_v56 }
0x1305   : > { %v2480_v60 = vpop.f32.mrb[0].mxu0 }
0x1306   : > { %2484 = vst [vmem:[#allocation14] sm:$0x3] %v2480_v60  ;;  %v2485_v62 = vpack.c.bf16 %v2480_v60, %v2480_v60  ;;  %v3211_v10 = vpop.f32.mrb[1].mxu0 }
0x1308   : > { %3229 = vmatmul.mubr.bf16.vlgmr.msra.gmra.mrb[0].mxu1 %v2485_v62 }
0x13db   : > { %v2591_v0 = vpop.f32.mrb[0].mxu1 }
0x13dc   : > { %v2592_v2 = vadd.f32 %v2932_v63, %v2591_v0  ;;  %v3230_v3 = vpop.f32.mrb[1].mxu1 }
0x13dd   : > { %v2594_v5 = vpop.f32.mrb[2].mxu1 }
0x13de   : > { %2597 = vst [vmem:[#allocation13] sm:$0x3] %v2592_v2  ;;  %v3231_v11 = vpop.f32.mrb[3].mxu1 }
0x13df PF: > { %p3305_p8 = scmp.eq.s32.totalorder %s3863_s0, 1  ;;  %s3775_s17 = smov [#allocation13]  }
0x13e0   : > { %s2605_s19 = sshll.u32 %s3775_s17, 4  ;;  %s3776_s22 = smov [#allocation14]   ;;  %s2606_s19 = int_to_ptr.vmem [resolvable:$true] %s2605_s19 }
0x13e1   : > { %s2616_s30 = sshll.u32 %s3776_s22, 4  ;;  %s3650_s29 = scalar_lea.vmem %s2606_s19, 32  ;;  %s2617_s30 = int_to_ptr.vmem [resolvable:$true] %s2616_s30 }
0x13e2   : > { %p3651_p11 = scmp.ne.s32.totalorder %s2606_s19, %s3650_s29  ;;  %p3657_p0 = scmp.lt.s32.totalorder %s2606_s19, %s2606_s19 }
0x13e3   : > { %p3658_p7 = scmp.lt.s32.totalorder %s3650_s29, %s3650_s29 }
0x13e4   : > { %p3652_p4 = pnand %p3651_p11, %p3305_p8 }
0x13e5   : > { %p3659_p2 = por %p3658_p7, %p3657_p0 }
0x13e6   : > { %p3653_p12 = pneg %p3652_p4 }
0x13e8   : > { %p3660_p10 = pnand %p3659_p2, %p3653_p12 }
0x13ea   : > { %3663 = shalt.err (!%p3660_p10)
}
0x13eb   : > { %s3664_s14 = scalar_lea.hbm %s4437_s9, 32 }
0x13ec   : > { %p3665_p1 = scmp.ne.s32.totalorder %s4437_s9, %s3664_s14  ;;  %p3670_p9 = scmp.lt.u32.totalorder %s3664_s14, %s4437_s9 }
0x13ee   : > { %p3666_p13 = pnand %p3665_p1, %p3305_p8 }
0x13f0   : > { %p3667_p3 = pneg %p3666_p13 }
0x13f2   : > { %p3672_p5 = pnand %p3670_p9, %p3667_p3 }
0x13f4   : > { %3675 = shalt.err (!%p3672_p5)
}
0x13f5   : > { %3284 = dma.vmem_to_hbm [thread:$0]  (%p3305_p8), %s2606_s19, 32, %s4437_s9, [#allocation7]  }
0x13f6   : > { %s3676_s11 = scalar_lea.vmem %s2617_s30, 32  ;;  %p3683_p12 = scmp.lt.s32.totalorder %s2617_s30, %s2617_s30 }
0x13f7   : > { %p3677_p6 = scmp.ne.s32.totalorder %s2617_s30, %s3676_s11  ;;  %p3684_p0 = scmp.lt.s32.totalorder %s3676_s11, %s3676_s11 }
0x13f9   : > { %p3678_p11 = pnand %p3677_p6, %p3305_p8  ;;  %p3685_p7 = por %p3684_p0, %p3683_p12 }
0x13fb   : > { %p3679_p4 = pneg %p3678_p11 }
0x13fd   : > { %p3686_p2 = pnand %p3685_p7, %p3679_p4 }
0x13ff   : > { %3689 = shalt.err (!%p3686_p2)
}
0x1400   : > { %s3690_s26 = scalar_lea.hbm %s4438_s10, 32 }
0x1401   : > { %p3691_p10 = scmp.ne.s32.totalorder %s4438_s10, %s3690_s26  ;;  %p3696_p3 = scmp.lt.u32.totalorder %s3690_s26, %s4438_s10 }
0x1403   : > { %p3692_p1 = pnand %p3691_p10, %p3305_p8 }
0x1405   : > { %p3693_p13 = pneg %p3692_p1 }
0x1407   : > { %p3698_p9 = pnand %p3696_p3, %p3693_p13 }
0x1409   : > { %3701 = shalt.err (!%p3698_p9)
}
0x140a   : > { %3286 = dma.vmem_to_hbm [thread:$0]  (%p3305_p8), %s2617_s30, 32, %s4438_s10, [#allocation15]  }
0x140b   : > { %3733 = dma.done.wait (%p3305_p8), [#allocation7], 32  }
0x140c   : > { %3735 = vsyncadd (%p3305_p8), [#allocation7], 4294967264 }
0x140d   : > { %3737 = dma.done.wait (%p3305_p8), [#allocation15], 32  }
0x140e   : > { %3739 = vsyncadd (%p3305_p8), [#allocation15], 4294967264 }
0x140f PF: > { %s4462_s16 = sld [smem:[#allocation22_spill]]  ;;  %s4463_s25 = sld [smem:[#allocation23_spill]] }
0x1410   : > { %p33_p5 = scmp.ge.s32.totalorder %s3866_s27, 4   ;;  %s4464_s23 = smov %s3746_s24 }
0x1411   : > { %s4466_s26 = smov %s3866_s27 }
0x1412   :  { %35 = sbr.rel (!%p33_p5) target bundleno = 22 (0x16), region = 148 }
0x1415   : > { %s4465_s24 = smov %s4462_s16 }
0x1419   :  { %2633 = vsyncpa [#allocation6], 1 }
0x141a   :  { %2635 = vsyncpa [#allocation6 + $0x1], 1 }
0x141b   :  { %2636 = vsyncpa [#allocation9], 1 }
0x141c   :  { %2638 = vsyncpa [#allocation9 + $0x1], 1 }
0x141d   :  { %2639 = vsyncpa [#allocation12], 1 }
0x141e   :  { %2641 = vsyncpa [#allocation12 + $0x1], 1 }
0x141f   :  { %2642 = vsyncpa [#allocation7], 1 }
0x1420   :  { %2644 = vsyncpa [#allocation7 + $0x1], 1 }
0x1421   :  { %2645 = vsyncpa [#allocation15], 1 }

</bundles_post_ra>
